<compile_context>
chip_gen: v7x
topology: tpu7x:2x2x1
jax: 0.10.0
libtpu: 0.0.40
codegen_flags: <defaults>
</compile_context>

<pallas_src>
import jax
import jax.numpy as jnp
from jax.experimental import pallas as pl
from jax.experimental.pallas import tpu as pltpu


def _round_up(x, m):
    return (x + m - 1) // m * m


def _vmem_budget_bytes():
    """Generation-aware usable-VMEM budget (~3/4 of physical)."""
    try:
        cap = int(getattr(pltpu.get_tpu_info(), "vmem_capacity_bytes", 0)) or (64 << 20)
    except Exception:
        cap = 64 << 20                      # conservative (v7x-sized) fallback
    return max(32 << 20, cap * 3 // 4)      # ~48 MiB on v7x, ~96 MiB on v5e/v6e


def _pick_tb(B, in_c, max_width, out_cols, stream_itemsize, weights_bytes, budget):
    """Largest batch tile that fits the VMEM budget, capped at the ~2 MiB/stream
    amortization target and at B/4 (>=4 grid steps for v7x megacore)."""
    per_row = (2 * 2 * in_c * stream_itemsize      # x_i, x_j double-buffered streams
               + 3 * max_width * 4                 # ~3 f32 intermediates at widest layer
               + 2 * out_cols * 4)                 # output, double-buffered
    avail = max(budget - weights_bytes - (2 << 20), 0)   # headroom for compiler scratch
    cap_vmem = max(128, (avail // per_row) // 128 * 128)
    # ~2 MiB per input stream per step amortizes the ~0.35us per-grid-step overhead.
    target = _round_up(max(1, (2 << 20) // max(1, in_c * stream_itemsize)), 128)
    # Keep >=4 grid steps when the batch allows (both v7x TensorCores get work).
    cap_mega = max(128, _round_up(pl.cdiv(B, 4), 128))
    return max(128, min(target, cap_vmem, cap_mega))


def _make_kernel(lane_dense, n_layers):
    """Ref order: x_i, x_j, w1, b1, ..., wn, bn, out."""

    def kernel(*refs):
        xi_ref, xj_ref = refs[0], refs[1]
        o_ref = refs[-1]
        wb_refs = refs[2:-1]

        # Hadamard product of the two node embeddings (VPU), in the streamed dtype.
        h = xi_ref[...] * xj_ref[...]

        # Hidden layers: MXU matmul with f32 accumulation; result downcast to the
        # compute dtype for a packed bias-add + ReLU.
        for l in range(n_layers - 1):
            w_ref = wb_refs[2 * l]
            b_ref = wb_refs[2 * l + 1]
            acc = jnp.dot(h.astype(w_ref.dtype), w_ref[...],
                          preferred_element_type=jnp.float32)
            h = jnp.maximum(acc.astype(b_ref.dtype) + b_ref[...], 0.0)
            # TODO(synk): F.dropout is identity in eval mode; training-mode dropout
            # (pltpu.prng_seed / prng_random_bits masking) is not implemented.

        wN_ref = wb_refs[-2]
        bN_ref = wb_refs[-1]

        if lane_dense:
            # out_channels == 1: VPU multiply + lane reduce instead of an N=1 MXU
            # matmul; per-row results are packed batch-along-lanes so the store is
            # dense/unmasked and the HBM writeback is contiguous.
            _, g, lanes = o_ref.shape            # (1, tb//128, 128)
            hid = h.shape[-1]
            h3 = h.reshape(g, lanes, hid).astype(jnp.float32)     # leading-dim split
            logits = jnp.sum(h3 * wN_ref[...], axis=-1) + bN_ref[...]   # (g, 128)
            o_ref[...] = jax.nn.sigmoid(logits)[None].astype(o_ref.dtype)
        else:
            logits = jnp.dot(h.astype(jnp.float32), wN_ref[...],
                             preferred_element_type=jnp.float32) + bN_ref[...]
            o_ref[...] = jax.nn.sigmoid(logits).astype(o_ref.dtype)

    return kernel


def link_predictor_forward(x_i, x_j, params, *, tb=None, compute_dtype=jnp.bfloat16,
                           single_buffer_weights=True):
    """params = (w1, b1, ..., wn, bn) with w_k shaped [in, out] (W^T vs torch),
    b_k shaped [1, out].

    compute_dtype controls the streamed activations and the hidden-layer
    weights/biases (matmuls accumulate in f32; final layer + sigmoid stay f32).
    Default bfloat16 halves HBM traffic on every generation; pass jnp.float32
    for strict accuracy."""
    assert len(params) >= 4 and len(params) % 2 == 0
    ws = list(params[0::2])
    bs = list(params[1::2])
    n_layers = len(ws)

    B, in_c = x_i.shape
    out_c = ws[-1].shape[1]
    lane_dense = (out_c == 1)

    cdt = jnp.dtype(compute_dtype) if compute_dtype is not None else jnp.dtype(jnp.float32)
    f32 = jnp.dtype(jnp.float32)
    x_i = x_i.astype(cdt)
    x_j = x_j.astype(cdt)
    ws = [w.astype(cdt) for w in ws[:-1]] + [ws[-1].astype(f32)]
    bs = [b.astype(cdt) for b in bs[:-1]] + [bs[-1].astype(f32)]

    # --- batch tile selection (VMEM-budgeted, generation aware) ---------------
    budget = _vmem_budget_bytes()
    weights_bytes = 2 * sum(int(a.size) * a.dtype.itemsize for a in ws + bs)
    max_width = max([in_c] + [w.shape[1] for w in ws])
    if tb is None:
        tb = _pick_tb(B, in_c, max_width, 1 if lane_dense else out_c,
                      cdt.itemsize, weights_bytes, budget)
    if tb % 128 != 0:
        raise ValueError("tb must be a multiple of 128")

    # Ragged last block: no jnp.pad copy of the inputs; Pallas masks the edges and
    # out-of-range rows are sliced off below (rows are independent).
    grid = (pl.cdiv(B, tb),)
    n_blocks = grid[0]

    # Weight/bias inputs; final (hid, 1) weight becomes a (1, hid) row for the VPU
    # lane-reduce epilogue.
    wb_inputs = []
    for li, (w, b) in enumerate(zip(ws, bs)):
        if lane_dense and li == n_layers - 1:
            w = w.reshape(1, w.shape[0])
        wb_inputs += [w, b]

    if lane_dense:
        out_shape = jax.ShapeDtypeStruct((n_blocks, tb // 128, 128), jnp.float32)
        out_spec = pl.BlockSpec((1, tb // 128, 128), lambda i: (i, 0, 0))
    else:
        out_shape = jax.ShapeDtypeStruct((B, out_c), jnp.float32)
        out_spec = pl.BlockSpec((tb, out_c), lambda i: (i, 0))

    def run(single_buffer):
        def resident_spec(shape):
            kwargs = {}
            if single_buffer:
                # Constant index_map -> the block never changes; one buffer suffices.
                kwargs["pipeline_mode"] = pl.Buffered(1)
            return pl.BlockSpec(shape, lambda i: (0,) * len(shape), **kwargs)

        in_specs = [pl.BlockSpec((tb, in_c), lambda i: (i, 0)),
                    pl.BlockSpec((tb, in_c), lambda i: (i, 0))]
        for a in wb_inputs:
            in_specs.append(resident_spec(a.shape))

        return pl.pallas_call(
            _make_kernel(lane_dense, n_layers),
            out_shape=out_shape,
            grid_spec=pltpu.PrefetchScalarGridSpec(
                num_scalar_prefetch=0,
                grid=grid,
                in_specs=in_specs,
                out_specs=out_spec),
            compiler_params=pltpu.CompilerParams(
                dimension_semantics=("parallel",),
                vmem_limit_bytes=int(budget)),
        )(x_i, x_j, *wb_inputs)

    if single_buffer_weights:
        try:
            out = run(True)
        except Exception:
            # Installed JAX may not support pipeline_mode / Buffered(1); fall back.
            out = run(False)
    else:
        out = run(False)

    if lane_dense:
        out = out.reshape(n_blocks * tb, 1)[:B]
    return out


def init_params(key, in_channels, hidden_channels, out_channels, num_layers=3):
    """Deterministic init mimicking torch.nn.Linear (uniform +/- 1/sqrt(fan_in)).
    Weights stored as [in, out] (i.e. already W^T relative to torch)."""
    dims = [in_channels] + [hidden_channels] * (num_layers - 1) + [out_channels]
    params = []
    for fan_in, fan_out in zip(dims[:-1], dims[1:]):
        key, kw, kb = jax.random.split(key, 3)
        bound = 1.0 / jnp.sqrt(fan_in)
        w = jax.random.uniform(kw, (fan_in, fan_out), jnp.float32, -bound, bound)
        b = jax.random.uniform(kb, (1, fan_out), jnp.float32, -bound, bound)
        params += [w, b]
    return tuple(params)


def reference_forward(x_i, x_j, params):
    ws = list(params[0::2])
    bs = list(params[1::2])
    x = x_i * x_j
    for w, b in zip(ws[:-1], bs[:-1]):
        x = jnp.maximum(x @ w + b, 0.0)
    return jax.nn.sigmoid(x @ ws[-1] + bs[-1])


if __name__ == "__main__":
    # Small shapes consistent with the module: num_layers=3, dropout=0.0 (eval).
    # B=500 intentionally not a tile multiple to exercise the ragged last block.
    B, in_channels, hidden_channels, out_channels, num_layers = 500, 32, 32, 1, 3

    key = jax.random.PRNGKey(0)
    k_params, k_xi, k_xj, k_p2 = jax.random.split(key, 4)

    params = init_params(k_params, in_channels, hidden_channels, out_channels,
                         num_layers)
    x_i = jax.random.normal(k_xi, (B, in_channels), jnp.float32)
    x_j = jax.random.normal(k_xj, (B, in_channels), jnp.float32)
    ref = reference_forward(x_i, x_j, params)

    # Default path: bf16 streaming (recommended on all generations).
    out_bf16 = jax.block_until_ready(link_predictor_forward(x_i, x_j, params))
    assert out_bf16.shape == (B, out_channels), out_bf16.shape
    assert jnp.allclose(out_bf16, ref, atol=3e-2, rtol=3e-2), "bf16 path mismatch"

    # f32 path: bit-tight check of the kernel structure.
    out_f32 = jax.block_until_ready(
        link_predictor_forward(x_i, x_j, params, compute_dtype=jnp.float32))
    assert out_f32.shape == (B, out_channels), out_f32.shape
    assert jnp.allclose(out_f32, ref, atol=1e-5, rtol=1e-5), "f32 path mismatch"

    # out_channels > 1 exercises the plain MXU epilogue (non lane-dense output).
    params8 = init_params(k_p2, in_channels, hidden_channels, 8, num_layers)
    ref8 = reference_forward(x_i, x_j, params8)
    out8 = jax.block_until_ready(
        link_predictor_forward(x_i, x_j, params8, compute_dtype=jnp.float32))
    assert out8.shape == (B, 8), out8.shape
    assert jnp.allclose(out8, ref8, atol=1e-5, rtol=1e-5), "out_c>1 path mismatch"

    print("KERNEL_OK")
</pallas_src>

<mosaic_0001>
module attributes {stable_mosaic.version = 11 : i64} {
  func.func @kernel(%arg0: i32, %arg1: memref<128x32xbf16, #tpu.memory_space<vmem>>, %arg2: memref<128x32xbf16, #tpu.memory_space<vmem>>, %arg3: memref<32x32xbf16, #tpu.memory_space<vmem>>, %arg4: memref<1x32xbf16, #tpu.memory_space<vmem>>, %arg5: memref<32x32xbf16, #tpu.memory_space<vmem>>, %arg6: memref<1x32xbf16, #tpu.memory_space<vmem>>, %arg7: memref<1x32xf32, #tpu.memory_space<vmem>>, %arg8: memref<1x1xf32, #tpu.memory_space<vmem>>, %arg9: memref<1x1x128xf32, #tpu.memory_space<vmem>>) attributes {dimension_semantics = [#tpu.dimension_semantics<parallel>], iteration_bounds = array<i64: 4>, scalar_prefetch = 0 : i64, scratch_operands = 0 : i64, tpu.core_type = #tpu.core_type<tc>, window_params = [{transform_indices = @transform_0, window_bounds = array<i64: 128, 32>}, {transform_indices = @transform_1, window_bounds = array<i64: 128, 32>}, {pipeline_mode = #tpu.pipeline_mode<synchronous>, transform_indices = @transform_2, window_bounds = array<i64: 32, 32>}, {pipeline_mode = #tpu.pipeline_mode<synchronous>, transform_indices = @transform_3, window_bounds = array<i64: 1, 32>}, {pipeline_mode = #tpu.pipeline_mode<synchronous>, transform_indices = @transform_4, window_bounds = array<i64: 32, 32>}, {pipeline_mode = #tpu.pipeline_mode<synchronous>, transform_indices = @transform_5, window_bounds = array<i64: 1, 32>}, {pipeline_mode = #tpu.pipeline_mode<synchronous>, transform_indices = @transform_6, window_bounds = array<i64: 1, 32>}, {pipeline_mode = #tpu.pipeline_mode<synchronous>, transform_indices = @transform_7, window_bounds = array<i64: 1, 1>}, {transform_indices = @transform_8, window_bounds = array<i64: 1, 1, 128>}]} {
    %c0 = arith.constant 0 : index
    %c0_0 = arith.constant 0 : index
    %0 = vector.load %arg1[%c0, %c0_0] : memref<128x32xbf16, #tpu.memory_space<vmem>>, vector<128x32xbf16>
    %c0_1 = arith.constant 0 : index
    %c0_2 = arith.constant 0 : index
    %1 = vector.load %arg2[%c0_1, %c0_2] : memref<128x32xbf16, #tpu.memory_space<vmem>>, vector<128x32xbf16>
    %2 = arith.mulf %0, %1 : vector<128x32xbf16>
    %c0_3 = arith.constant 0 : index
    %c0_4 = arith.constant 0 : index
    %3 = vector.load %arg3[%c0_3, %c0_4] : memref<32x32xbf16, #tpu.memory_space<vmem>>, vector<32x32xbf16>
    %cst = arith.constant dense<0.000000e+00> : vector<128x32xf32>
    %4 = tpu.matmul %2, %3, %cst {dimension_numbers = #tpu.dot_dimension_numbers<[1], [0], [0], [1], [0, 0, 1, 1], [], []>} : vector<128x32xbf16>, vector<32x32xbf16>, vector<128x32xf32> -> vector<128x32xf32>
    %5 = arith.truncf %4 : vector<128x32xf32> to vector<128x32xbf16>
    %c0_5 = arith.constant 0 : index
    %c0_6 = arith.constant 0 : index
    %6 = vector.load %arg4[%c0_5, %c0_6] : memref<1x32xbf16, #tpu.memory_space<vmem>>, vector<1x32xbf16>
    %7 = vector.broadcast %6 : vector<1x32xbf16> to vector<128x32xbf16>
    %8 = arith.addf %5, %7 : vector<128x32xbf16>
    %cst_7 = arith.constant 0.000000e+00 : bf16
    %9 = vector.broadcast %cst_7 : bf16 to vector<128x32xbf16>
    %10 = arith.maximumf %8, %9 : vector<128x32xbf16>
    %c0_8 = arith.constant 0 : index
    %c0_9 = arith.constant 0 : index
    %11 = vector.load %arg5[%c0_8, %c0_9] : memref<32x32xbf16, #tpu.memory_space<vmem>>, vector<32x32xbf16>
    %cst_10 = arith.constant dense<0.000000e+00> : vector<128x32xf32>
    %12 = tpu.matmul %10, %11, %cst_10 {dimension_numbers = #tpu.dot_dimension_numbers<[1], [0], [0], [1], [0, 0, 1, 1], [], []>} : vector<128x32xbf16>, vector<32x32xbf16>, vector<128x32xf32> -> vector<128x32xf32>
    %13 = arith.truncf %12 : vector<128x32xf32> to vector<128x32xbf16>
    %c0_11 = arith.constant 0 : index
    %c0_12 = arith.constant 0 : index
    %14 = vector.load %arg6[%c0_11, %c0_12] : memref<1x32xbf16, #tpu.memory_space<vmem>>, vector<1x32xbf16>
    %15 = vector.broadcast %14 : vector<1x32xbf16> to vector<128x32xbf16>
    %16 = arith.addf %13, %15 : vector<128x32xbf16>
    %cst_13 = arith.constant 0.000000e+00 : bf16
    %17 = vector.broadcast %cst_13 : bf16 to vector<128x32xbf16>
    %18 = arith.maximumf %16, %17 : vector<128x32xbf16>
    %19 = vector.shape_cast %18 : vector<128x32xbf16> to vector<1x128x32xbf16>
    %20 = arith.extf %19 : vector<1x128x32xbf16> to vector<1x128x32xf32>
    %c0_14 = arith.constant 0 : index
    %c0_15 = arith.constant 0 : index
    %21 = vector.load %arg7[%c0_14, %c0_15] : memref<1x32xf32, #tpu.memory_space<vmem>>, vector<1x32xf32>
    %22 = vector.shape_cast %21 : vector<1x32xf32> to vector<1x1x32xf32>
    %23 = vector.broadcast %22 : vector<1x1x32xf32> to vector<1x128x32xf32>
    %24 = arith.mulf %20, %23 : vector<1x128x32xf32>
    %cst_16 = arith.constant dense<0.000000e+00> : vector<1x128xf32>
    %25 = vector.multi_reduction <add>, %24, %cst_16 [2] : vector<1x128x32xf32> to vector<1x128xf32>
    %c0_17 = arith.constant 0 : index
    %c0_18 = arith.constant 0 : index
    %26 = vector.load %arg8[%c0_17, %c0_18] : memref<1x1xf32, #tpu.memory_space<vmem>>, vector<1x1xf32>
    %27 = vector.broadcast %26 : vector<1x1xf32> to vector<1x128xf32>
    %28 = arith.addf %25, %27 : vector<1x128xf32>
    %29 = arith.negf %28 : vector<1x128xf32>
    %30 = math.exp %29 : vector<1x128xf32>
    %cst_19 = arith.constant 1.000000e+00 : f32
    %31 = vector.broadcast %cst_19 : f32 to vector<1x128xf32>
    %32 = arith.addf %31, %30 : vector<1x128xf32>
    %33 = arith.divf %31, %32 : vector<1x128xf32>
    %34 = vector.shape_cast %33 : vector<1x128xf32> to vector<1x1x128xf32>
    %c0_20 = arith.constant 0 : index
    %c0_21 = arith.constant 0 : index
    %c0_22 = arith.constant 0 : index
    %35 = vector.load %arg9[%c0_20, %c0_21, %c0_22] : memref<1x1x128xf32, #tpu.memory_space<vmem>>, vector<1x1x128xf32>
    tpu.vector_store %arg9[%c0_20, %c0_21, %c0_22], %34 {strides = array<i32>} : memref<1x1x128xf32, #tpu.memory_space<vmem>>, vector<1x1x128xf32>,
    return
  }
  func.func @transform_0(%arg0: i32) -> (i32, i32) {
    %c0_i32 = arith.constant 0 : i32
    %c0_i32_0 = arith.constant 0 : i32
    return %arg0, %c0_i32 : i32, i32
  }
  func.func @transform_1(%arg0: i32) -> (i32, i32) {
    %c0_i32 = arith.constant 0 : i32
    %c0_i32_0 = arith.constant 0 : i32
    return %arg0, %c0_i32 : i32, i32
  }
  func.func @transform_2(%arg0: i32) -> (i32, i32) {
    %c0_i32 = arith.constant 0 : i32
    %c0_i32_0 = arith.constant 0 : i32
    %c0_i32_1 = arith.constant 0 : i32
    return %c0_i32, %c0_i32_0 : i32, i32
  }
  func.func @transform_3(%arg0: i32) -> (i32, i32) {
    %c0_i32 = arith.constant 0 : i32
    %c0_i32_0 = arith.constant 0 : i32
    %c0_i32_1 = arith.constant 0 : i32
    return %c0_i32, %c0_i32_0 : i32, i32
  }
  func.func @transform_4(%arg0: i32) -> (i32, i32) {
    %c0_i32 = arith.constant 0 : i32
    %c0_i32_0 = arith.constant 0 : i32
    %c0_i32_1 = arith.constant 0 : i32
    return %c0_i32, %c0_i32_0 : i32, i32
  }
  func.func @transform_5(%arg0: i32) -> (i32, i32) {
    %c0_i32 = arith.constant 0 : i32
    %c0_i32_0 = arith.constant 0 : i32
    %c0_i32_1 = arith.constant 0 : i32
    return %c0_i32, %c0_i32_0 : i32, i32
  }
  func.func @transform_6(%arg0: i32) -> (i32, i32) {
    %c0_i32 = arith.constant 0 : i32
    %c0_i32_0 = arith.constant 0 : i32
    %c0_i32_1 = arith.constant 0 : i32
    return %c0_i32, %c0_i32_0 : i32, i32
  }
  func.func @transform_7(%arg0: i32) -> (i32, i32) {
    %c0_i32 = arith.constant 0 : i32
    %c0_i32_0 = arith.constant 0 : i32
    %c0_i32_1 = arith.constant 0 : i32
    return %c0_i32, %c0_i32_0 : i32, i32
  }
  func.func @transform_8(%arg0: i32) -> (i32, i32, i32) {
    %c0_i32 = arith.constant 0 : i32
    %c0_i32_0 = arith.constant 0 : i32
    %c0_i32_1 = arith.constant 0 : i32
    return %arg0, %c0_i32, %c0_i32_0 : i32, i32, i32
  }
}

module attributes {stable_mosaic.version = 11 : i64} {
  func.func @kernel(%arg0: i32, %arg1: memref<128x32xbf16, #tpu.memory_space<vmem>>, %arg2: memref<128x32xbf16, #tpu.memory_space<vmem>>, %arg3: memref<32x32xbf16, #tpu.memory_space<vmem>>, %arg4: memref<1x32xbf16, #tpu.memory_space<vmem>>, %arg5: memref<32x32xbf16, #tpu.memory_space<vmem>>, %arg6: memref<1x32xbf16, #tpu.memory_space<vmem>>, %arg7: memref<1x32xf32, #tpu.memory_space<vmem>>, %arg8: memref<1x1xf32, #tpu.memory_space<vmem>>, %arg9: memref<1x1x128xf32, #tpu.memory_space<vmem>>) attributes {dimension_semantics = [#tpu.dimension_semantics<parallel>], iteration_bounds = array<i64: 4>, scalar_prefetch = 0 : i64, scratch_operands = 0 : i64, tpu.core_type = #tpu.core_type<tc>, window_params = [{transform_indices = @transform_0, window_bounds = array<i64: 128, 32>}, {transform_indices = @transform_1, window_bounds = array<i64: 128, 32>}, {pipeline_mode = #tpu.pipeline_mode<synchronous>, transform_indices = @transform_2, window_bounds = array<i64: 32, 32>}, {pipeline_mode = #tpu.pipeline_mode<synchronous>, transform_indices = @transform_3, window_bounds = array<i64: 1, 32>}, {pipeline_mode = #tpu.pipeline_mode<synchronous>, transform_indices = @transform_4, window_bounds = array<i64: 32, 32>}, {pipeline_mode = #tpu.pipeline_mode<synchronous>, transform_indices = @transform_5, window_bounds = array<i64: 1, 32>}, {pipeline_mode = #tpu.pipeline_mode<synchronous>, transform_indices = @transform_6, window_bounds = array<i64: 1, 32>}, {pipeline_mode = #tpu.pipeline_mode<synchronous>, transform_indices = @transform_7, window_bounds = array<i64: 1, 1>}, {transform_indices = @transform_8, window_bounds = array<i64: 1, 1, 128>}]} {
    %c0 = arith.constant 0 : index
    %c0_0 = arith.constant 0 : index
    %0 = vector.load %arg1[%c0, %c0_0] : memref<128x32xbf16, #tpu.memory_space<vmem>>, vector<128x32xbf16>
    %c0_1 = arith.constant 0 : index
    %c0_2 = arith.constant 0 : index
    %1 = vector.load %arg2[%c0_1, %c0_2] : memref<128x32xbf16, #tpu.memory_space<vmem>>, vector<128x32xbf16>
    %2 = arith.mulf %0, %1 : vector<128x32xbf16>
    %c0_3 = arith.constant 0 : index
    %c0_4 = arith.constant 0 : index
    %3 = vector.load %arg3[%c0_3, %c0_4] : memref<32x32xbf16, #tpu.memory_space<vmem>>, vector<32x32xbf16>
    %cst = arith.constant dense<0.000000e+00> : vector<128x32xf32>
    %4 = tpu.matmul %2, %3, %cst {dimension_numbers = #tpu.dot_dimension_numbers<[1], [0], [0], [1], [0, 0, 1, 1], [], []>} : vector<128x32xbf16>, vector<32x32xbf16>, vector<128x32xf32> -> vector<128x32xf32>
    %5 = arith.truncf %4 : vector<128x32xf32> to vector<128x32xbf16>
    %c0_5 = arith.constant 0 : index
    %c0_6 = arith.constant 0 : index
    %6 = vector.load %arg4[%c0_5, %c0_6] : memref<1x32xbf16, #tpu.memory_space<vmem>>, vector<1x32xbf16>
    %7 = vector.broadcast %6 : vector<1x32xbf16> to vector<128x32xbf16>
    %8 = arith.addf %5, %7 : vector<128x32xbf16>
    %cst_7 = arith.constant 0.000000e+00 : bf16
    %9 = vector.broadcast %cst_7 : bf16 to vector<128x32xbf16>
    %10 = arith.maximumf %8, %9 : vector<128x32xbf16>
    %c0_8 = arith.constant 0 : index
    %c0_9 = arith.constant 0 : index
    %11 = vector.load %arg5[%c0_8, %c0_9] : memref<32x32xbf16, #tpu.memory_space<vmem>>, vector<32x32xbf16>
    %cst_10 = arith.constant dense<0.000000e+00> : vector<128x32xf32>
    %12 = tpu.matmul %10, %11, %cst_10 {dimension_numbers = #tpu.dot_dimension_numbers<[1], [0], [0], [1], [0, 0, 1, 1], [], []>} : vector<128x32xbf16>, vector<32x32xbf16>, vector<128x32xf32> -> vector<128x32xf32>
    %13 = arith.truncf %12 : vector<128x32xf32> to vector<128x32xbf16>
    %c0_11 = arith.constant 0 : index
    %c0_12 = arith.constant 0 : index
    %14 = vector.load %arg6[%c0_11, %c0_12] : memref<1x32xbf16, #tpu.memory_space<vmem>>, vector<1x32xbf16>
    %15 = vector.broadcast %14 : vector<1x32xbf16> to vector<128x32xbf16>
    %16 = arith.addf %13, %15 : vector<128x32xbf16>
    %cst_13 = arith.constant 0.000000e+00 : bf16
    %17 = vector.broadcast %cst_13 : bf16 to vector<128x32xbf16>
    %18 = arith.maximumf %16, %17 : vector<128x32xbf16>
    %19 = vector.shape_cast %18 : vector<128x32xbf16> to vector<1x128x32xbf16>
    %20 = arith.extf %19 : vector<1x128x32xbf16> to vector<1x128x32xf32>
    %c0_14 = arith.constant 0 : index
    %c0_15 = arith.constant 0 : index
    %21 = vector.load %arg7[%c0_14, %c0_15] : memref<1x32xf32, #tpu.memory_space<vmem>>, vector<1x32xf32>
    %22 = vector.shape_cast %21 : vector<1x32xf32> to vector<1x1x32xf32>
    %23 = vector.broadcast %22 : vector<1x1x32xf32> to vector<1x128x32xf32>
    %24 = arith.mulf %20, %23 : vector<1x128x32xf32>
    %cst_16 = arith.constant dense<0.000000e+00> : vector<1x128xf32>
    %25 = vector.multi_reduction <add>, %24, %cst_16 [2] : vector<1x128x32xf32> to vector<1x128xf32>
    %c0_17 = arith.constant 0 : index
    %c0_18 = arith.constant 0 : index
    %26 = vector.load %arg8[%c0_17, %c0_18] : memref<1x1xf32, #tpu.memory_space<vmem>>, vector<1x1xf32>
    %27 = vector.broadcast %26 : vector<1x1xf32> to vector<1x128xf32>
    %28 = arith.addf %25, %27 : vector<1x128xf32>
    %29 = arith.negf %28 : vector<1x128xf32>
    %30 = math.exp %29 : vector<1x128xf32>
    %cst_19 = arith.constant 1.000000e+00 : f32
    %31 = vector.broadcast %cst_19 : f32 to vector<1x128xf32>
    %32 = arith.addf %31, %30 : vector<1x128xf32>
    %33 = arith.divf %31, %32 : vector<1x128xf32>
    %34 = vector.shape_cast %33 : vector<1x128xf32> to vector<1x1x128xf32>
    %c0_20 = arith.constant 0 : index
    %c0_21 = arith.constant 0 : index
    %c0_22 = arith.constant 0 : index
    %35 = vector.load %arg9[%c0_20, %c0_21, %c0_22] : memref<1x1x128xf32, #tpu.memory_space<vmem>>, vector<1x1x128xf32>
    tpu.vector_store %arg9[%c0_20, %c0_21, %c0_22], %34 {strides = array<i32>} : memref<1x1x128xf32, #tpu.memory_space<vmem>>, vector<1x1x128xf32>,
    return
  }
  func.func @transform_0(%arg0: i32) -> (i32, i32) {
    %c0_i32 = arith.constant 0 : i32
    %c0_i32_0 = arith.constant 0 : i32
    return %arg0, %c0_i32 : i32, i32
  }
  func.func @transform_1(%arg0: i32) -> (i32, i32) {
    %c0_i32 = arith.constant 0 : i32
    %c0_i32_0 = arith.constant 0 : i32
    return %arg0, %c0_i32 : i32, i32
  }
  func.func @transform_2(%arg0: i32) -> (i32, i32) {
    %c0_i32 = arith.constant 0 : i32
    %c0_i32_0 = arith.constant 0 : i32
    %c0_i32_1 = arith.constant 0 : i32
    return %c0_i32, %c0_i32_0 : i32, i32
  }
  func.func @transform_3(%arg0: i32) -> (i32, i32) {
    %c0_i32 = arith.constant 0 : i32
    %c0_i32_0 = arith.constant 0 : i32
    %c0_i32_1 = arith.constant 0 : i32
    return %c0_i32, %c0_i32_0 : i32, i32
  }
  func.func @transform_4(%arg0: i32) -> (i32, i32) {
    %c0_i32 = arith.constant 0 : i32
    %c0_i32_0 = arith.constant 0 : i32
    %c0_i32_1 = arith.constant 0 : i32
    return %c0_i32, %c0_i32_0 : i32, i32
  }
  func.func @transform_5(%arg0: i32) -> (i32, i32) {
    %c0_i32 = arith.constant 0 : i32
    %c0_i32_0 = arith.constant 0 : i32
    %c0_i32_1 = arith.constant 0 : i32
    return %c0_i32, %c0_i32_0 : i32, i32
  }
  func.func @transform_6(%arg0: i32) -> (i32, i32) {
    %c0_i32 = arith.constant 0 : i32
    %c0_i32_0 = arith.constant 0 : i32
    %c0_i32_1 = arith.constant 0 : i32
    return %c0_i32, %c0_i32_0 : i32, i32
  }
  func.func @transform_7(%arg0: i32) -> (i32, i32) {
    %c0_i32 = arith.constant 0 : i32
    %c0_i32_0 = arith.constant 0 : i32
    %c0_i32_1 = arith.constant 0 : i32
    return %c0_i32, %c0_i32_0 : i32, i32
  }
  func.func @transform_8(%arg0: i32) -> (i32, i32, i32) {
    %c0_i32 = arith.constant 0 : i32
    %c0_i32_0 = arith.constant 0 : i32
    %c0_i32_1 = arith.constant 0 : i32
    return %arg0, %c0_i32, %c0_i32_0 : i32, i32, i32
  }
}

</mosaic_0001>

<bundles_post_ra>
// kernel: tpu_custom_call.1
= control target key start
LH: loop header
LB: loop body
LE: loop exit
PB: predicated region body
PF: predicated region fallthrough
CT: control target
= control target key end

     0   :  { %s1859_s0 = inlined_call_operand.vmem [shape: bf16[500,32], index: 0, kind: input, shape index: {}]   ;;  %s1860_s1 = inlined_call_operand.vmem [shape: bf16[500,32], index: 1, kind: input, shape index: {}]   ;;  %s1861_s2 = inlined_call_operand.vmem [shape: bf16[32,32], index: 2, kind: input, shape index: {}]   ;;  %s1862_s3 = inlined_call_operand.vmem [shape: bf16[1,32], index: 3, kind: input, shape index: {}]   ;;  %s1863_s4 = inlined_call_operand.vmem [shape: bf16[32,32], index: 4, kind: input, shape index: {}]   ;;  %s1864_s5 = inlined_call_operand.vmem [shape: bf16[1,32], index: 5, kind: input, shape index: {}]   ;;  %s1865_s6 = inlined_call_operand.vmem [shape: f32[1,32], index: 6, kind: input, shape index: {}]   ;;  %s1866_s7 = inlined_call_operand.<no memory space> [shape: f32[1,1], index: 7, kind: input, shape index: {}]   ;;  %s1867_s8 = inlined_call_operand.hbm [shape: f32[4,1,128], index: 8, kind: output, shape index: {}]  }
   0x1   :  { %v13_v0 = vstv %s1866_s7 }
   0x2   :  { %14 = vst [vmem:[#allocation2] sm:$0x1] %v13_v0 }
   0x3   :  { %15 = vsyncpa [#allocation4], 0 }
   0x4   :  { %17 = vsyncpa [#allocation4 + $0x1], 0  ;;  %s1555_s29 = smov 0   ;;  %s1557_s30 = smov 0  }
   0x5   :  { %s1559_s9 = smov 0   ;;  %s1561_s10 = smov 0  }
   0x6 LB: > { %s1214_s7 = sadd.s32 4294967295, %s1503_s10   ;;  %s1215_s11 = sadd.s32 4294967294, %s1503_s10   ;;  %s1503_s10 = sphi %s1561_s10, %s1873_s10   ;;  %s1499_s9 = sphi %s1559_s9, %s1872_s9   ;;  %s1495_s30 = sphi %s1557_s30, %s1871_s30   ;;  %s1491_s29 = sphi %s1555_s29, %s1870_s29  }
   0x7   : > { %s1578_s12 = sadd.s32 1, %s1503_s10   ;;  %s208_s13 = sadd.s32 1, %s1499_s9 }
   0x8   : > { %s205_s14 = ssub.s32 %s1503_s10, %s1578_s12  ;;  %p218_p0 = scmp.ne.s32.totalorder %s1499_s9, %s1495_s30 }
   0x9   : > { %p206_p1 = scmp.eq.s32.totalorder %s205_s14, 0  ;;  %p219_p2 = scmp.eq.s32.totalorder %s1214_s7, 3 }
   0xa   : > { %p224_p3 = scmp.ne.s32.totalorder %s1495_s30, %s1491_s29  ;;  %p225_p4 = scmp.eq.s32.totalorder %s1215_s11, 3 }
   0xb   : > { %s1588_s15 = scalar_select %p206_p1, %s1499_s9, %s208_s13  }
   0xc   : > { %p1590_p5 = por %p219_p2, %p218_p0  ;;  %p1594_p6 = por %p225_p4, %p224_p3 }
   0xd   : > { %p1218_p7 = scmp.ge.s32.totalorder %s1503_s10, 1  ;;  %p295_p8 = scmp.lt.s32.totalorder %s1503_s10, 5 }
   0xf   : > { %p296_p9 = pnand %p1218_p7, %p295_p8 }
  0x10   : > { %v1373_v1 = vld [vmem:[%s1861_s2] sm:$0xff] (!%p296_p9)   ;;  %s1603_s20 = sshll.u32 (!%p296_p9), %s1214_s7, 4  ;;  %v1374_v2 = vld [vmem:[%s1861_s2 + $0x8] sm:$0xff] (!%p296_p9)   ;;  %vm474_vm0 = vcmask (!%p296_p9), 261120   ;;  %v1505_v61 = vmov (!%p296_p9), 0   ;;  %v608_v62 = vlaneseq (!%p296_p9)  ;;  %vm1033_vm1 = vcmask (!%p296_p9), 130112  }
  0x11   : > { %299 = sbr.rel (%p296_p9) target bundleno = 735 (0x2df), region = 52  ;;  %p346_p10 = scmp.lt.s32.totalorder (!%p296_p9), %s1603_s20, 62  ;;  %1291 = vmatprep.subr.bf16.mxu0 (!%p296_p9), %v1373_v1  ;;  %v1375_v59 = vld [vmem:[%s1863_s4] sm:$0xff] (!%p296_p9)   ;;  %v1376_v60 = vld [vmem:[%s1863_s4 + $0x8] sm:$0xff] (!%p296_p9)   ;;  %1371 = vset.pattern.permute.xlu1 (!%p296_p9), %v1505_v61  ;;  %vm1040_vm2 = vcmask (!%p296_p9), 195712   ;;  %vm1047_vm3 = vcmask (!%p296_p9), 261312  }
  0x12   : > { %1292 = vmatpush3.bf16.msra.mxu0 (!%p296_p9), %v1373_v1  ;;  %1311 = vmatprep.subr.bf16.mxu1 (!%p296_p9), %v1375_v59  ;;  %v1669_v63 = vshrl.u32 (!%p296_p9), %v608_v62, 7  ;;  %v604_v0 = vld [vmem:[%s1862_s3] sm:$0x1] (!%p296_p9)  ;;  %vm1054_vm4 = vcmask (!%p296_p9), 326912   ;;  %vm1061_vm5 = vcmask (!%p296_p9), 392512   ;;  %vm1068_vm6 = vcmask (!%p296_p9), 458112   ;;  %s1815_s14 = scalar_lea.hbm (!%p296_p9), %s1867_s8, %s1603_s20 }
  0x13   : > { %1293 = vmatprep.subr.bf16.mxu0 (!%p296_p9), %v1374_v2  ;;  %1312 = vmatpush3.bf16.msra.mxu1 (!%p296_p9), %v1375_v59  ;;  %v606_v1 = vpack.i.b16 (!%p296_p9), %v604_v0, %v604_v0  ;;  %vm1075_vm7 = vcmask (!%p296_p9), 523712   ;;  %vm1082_vm8 = vcmask (!%p296_p9), 589312   ;;  %vm1089_vm9 = vcmask (!%p296_p9), 654912   ;;  %s1506_s21 = smov (!%p296_p9), [#allocation3]  }
  0x14   : > { %1372 = vset.pattern.permute.xlu0 (!%p296_p9), %v1505_v61  ;;  %1313 = vmatprep.subr.bf16.mxu1 (!%p296_p9), %v1376_v60  ;;  %vm1096_vm10 = vcmask (!%p296_p9), 720512   ;;  %vm1103_vm11 = vcmask (!%p296_p9), 786112   ;;  %vm1110_vm12 = vcmask (!%p296_p9), 851712   ;;  %vm1117_vm13 = vcmask (!%p296_p9), 917312   ;;  %s1445_s22 = sshll.u32 (!%p296_p9), %s1506_s21, 4  ;;  %s1446_s22 = int_to_ptr.vmem [resolvable:$false] %s1445_s22 }
  0x15   : > { %vm1124_vm14 = vcmask (!%p296_p9), 982912   ;;  %vm1131_vm15 = vcmask (!%p296_p9), 1048512  }
  0x16   : > { %1294 = vmatpush3.bf16.msra.mxu0 (!%p296_p9), %v1374_v2  ;;  %v1675_v2 = vsub.s32 (!%p296_p9), 0, %v1669_v63 }
  0x17   : > { %1314 = vmatpush3.bf16.msra.mxu1 (!%p296_p9), %v1376_v60 }
  0x18   : > { %s347_s23 = scalar_select %p346_p10, %s1603_s20, 62 }
  0x1a   : > { %s1220_s24 = sshll.u32 %s347_s23, 2  ;;  %s1447_s23 = scalar_lea.vmem %s1446_s22, 32 }
  0x1b   : > { %s1613_s27 = scalar_lea.vmem %s1859_s0, %s1220_s24  ;;  %s1618_s11 = scalar_lea.vmem %s1860_s1, %s1220_s24 }
  0x1c   : > { %v370_v3 = vld [vmem:[%s1613_s27] sm:$0xf]  ;;  %v371_v4 = vld [vmem:[%s1613_s27 + $0x4] sm:$0xf]  ;;  %v372_v8 = vld [vmem:[%s1613_s27 + $0x8] sm:$0xf] }
  0x1d   : > { %v386_v5 = vld [vmem:[%s1618_s11] sm:$0xf]  ;;  %v387_v6 = vld [vmem:[%s1618_s11 + $0x4] sm:$0xf]  ;;  %v373_v9 = vld [vmem:[%s1613_s27 + $0xc] sm:$0xf] }
  0x1e   : > { %v402_v7 = vmul.bf16 %v386_v5, %v370_v3  ;;  %v403_v10 = vmul.bf16 %v387_v6, %v371_v4  ;;  %v388_v11 = vld [vmem:[%s1618_s11 + $0x8] sm:$0xf]  ;;  %v389_v12 = vld [vmem:[%s1618_s11 + $0xc] sm:$0xf]  ;;  %v374_v13 = vld [vmem:[%s1613_s27 + $0x10] sm:$0xf]  ;;  %v611_v5 = vrot.slane %v606_v1, %v1675_v2 }
  0x1f   : > { %v404_v14 = vmul.bf16 %v388_v11, %v372_v8  ;;  %v405_v15 = vmul.bf16 %v389_v12, %v373_v9  ;;  %v375_v16 = vld [vmem:[%s1613_s27 + $0x14] sm:$0xf]  ;;  %v390_v17 = vld [vmem:[%s1618_s11 + $0x10] sm:$0xf]  ;;  %v376_v22 = vld [vmem:[%s1613_s27 + $0x18] sm:$0xf] }
  0x20   : > { %v391_v18 = vld [vmem:[%s1618_s11 + $0x14] sm:$0xf]  ;;  %v1223_v19 = vcombine.low %v402_v7, %v403_v10  ;;  %v406_v20 = vmul.bf16 %v390_v17, %v374_v13  ;;  %v377_v23 = vld [vmem:[%s1613_s27 + $0x1c] sm:$0xf]  ;;  %v392_v24 = vld [vmem:[%s1618_s11 + $0x18] sm:$0xf] }
  0x21   : > { %v407_v21 = vmul.bf16 %v391_v18, %v375_v16  ;;  %v1224_v25 = vcombine.low %v404_v14, %v405_v15  ;;  %v393_v26 = vld [vmem:[%s1618_s11 + $0x1c] sm:$0xf]  ;;  %v378_v27 = vld [vmem:[%s1613_s27 + $0x20] sm:$0xf]  ;;  %v379_v28 = vld [vmem:[%s1613_s27 + $0x24] sm:$0xf]  ;;  %v408_v32 = vmul.bf16 %v392_v24, %v376_v22 }
  0x22   : > { %1295 = vmatprep.mubr.msk.bf16.mxu0 %vm474_vm0, %v1223_v19  ;;  %v394_v30 = vld [vmem:[%s1618_s11 + $0x20] sm:$0xf]  ;;  %v395_v31 = vld [vmem:[%s1618_s11 + $0x24] sm:$0xf]  ;;  %v409_v33 = vmul.bf16 %v393_v26, %v377_v23  ;;  %v380_v37 = vld [vmem:[%s1613_s27 + $0x28] sm:$0xf] }
  0x23   : > { %v1225_v29 = vcombine.low %v406_v20, %v407_v21  ;;  %1296 = vmatmul.mubr.msk.bf16.vlgmr.msra.gmra.mrb[0].mxu0 %vm474_vm0, %v1224_v25  ;;  %v410_v34 = vmul.bf16 %v394_v30, %v378_v27  ;;  %v411_v35 = vmul.bf16 %v395_v31, %v379_v28  ;;  %v381_v38 = vld [vmem:[%s1613_s27 + $0x2c] sm:$0xf]  ;;  %v396_v40 = vld [vmem:[%s1618_s11 + $0x28] sm:$0xf]  ;;  %v382_v42 = vld [vmem:[%s1613_s27 + $0x30] sm:$0xf] }
  0x24   : > { %v1226_v36 = vcombine.low %v408_v32, %v409_v33  ;;  %v397_v41 = vld [vmem:[%s1618_s11 + $0x2c] sm:$0xf]  ;;  %v383_v43 = vld [vmem:[%s1613_s27 + $0x34] sm:$0xf]  ;;  %v398_v44 = vld [vmem:[%s1618_s11 + $0x30] sm:$0xf]  ;;  %v412_v46 = vmul.bf16 %v396_v40, %v380_v37 }
  0x25   : > { %1299 = vmatprep.mubr.msk.bf16.mxu0 %vm474_vm0, %v1225_v29  ;;  %v1227_v39 = vcombine.low %v410_v34, %v411_v35  ;;  %v399_v45 = vld [vmem:[%s1618_s11 + $0x34] sm:$0xf]  ;;  %v413_v47 = vmul.bf16 %v397_v41, %v381_v38  ;;  %v414_v48 = vmul.bf16 %v398_v44, %v382_v42  ;;  %v384_v51 = vld [vmem:[%s1613_s27 + $0x38] sm:$0xf]  ;;  %v385_v53 = vld [vmem:[%s1613_s27 + $0x3c] sm:$0xf] }
  0x26   : > { %v415_v49 = vmul.bf16 %v399_v45, %v383_v43  ;;  %v400_v54 = vld [vmem:[%s1618_s11 + $0x38] sm:$0xf]  ;;  %v401_v55 = vld [vmem:[%s1618_s11 + $0x3c] sm:$0xf]  ;;  %v773_v44 = vld [vmem:[%s1864_s5] sm:$0x1] }
  0x27   : > { %v1228_v50 = vcombine.low %v412_v46, %v413_v47  ;;  %v416_v56 = vmul.bf16 %v400_v54, %v384_v51  ;;  %v417_v57 = vmul.bf16 %v401_v55, %v385_v53  ;;  %v775_v45 = vpack.i.b16 %v773_v44, %v773_v44  ;;  %s339_s27 = sand.u32 1, %s1495_s30  }
  0x28   : > { %v1229_v52 = vcombine.low %v414_v48, %v415_v49  ;;  %s340_s28 = scalar_lea.vmem [#allocation3], %s339_s27  ;;  %s1136_s18 = scalar_lea.sflag [#allocation4], %s339_s27 }
  0x29   : > { %v1230_v58 = vcombine.low %v416_v56, %v417_v57  ;;  %v1698_v48 = vrot.slane %v775_v45, %v1675_v2  ;;  %s1148_s7 = sshll.u32 %s340_s28, 4  ;;  %s1817_s7 = int_to_ptr.vmem [resolvable:$true] %s1148_s7 }
  0x2a   : > { %s1441_s19 = scalar_lea.vmem %s1817_s7, 16  ;;  %p1448_p0 = scmp.lt.s32.totalorder %s1817_s7, %s1446_s22 }
  0x2b   : > { %1300 = vmatmul.mubr.msk.bf16.gmra.mrb[4].mxu0 %vm474_vm0, %v1226_v36  ;;  %p1442_p11 = scmp.ne.s32.totalorder %s1817_s7, %s1441_s19  ;;  %p1449_p1 = scmp.lt.s32.totalorder %s1447_s23, %s1441_s19 }
  0x2c   : > { %1303 = vmatprep.mubr.msk.bf16.mxu0 %vm474_vm0, %v1227_v39 }
  0x2d   : > { %p1443_p12 = pnand %p1442_p11, %p1590_p5  ;;  %p1450_p2 = por %p1449_p1, %p1448_p0 }
  0x2f   : > { %p1444_p13 = pneg %p1443_p12 }
  0x31   : > { %p1451_p3 = pnand %p1450_p2, %p1444_p13 }
  0x33   : > { %1304 = vmatmul.mubr.msk.bf16.gmra.mrb[8].mxu0 %vm474_vm0, %v1228_v50 }
  0x34   : > { %1307 = vmatprep.mubr.msk.bf16.mxu0 %vm474_vm0, %v1229_v52 }
  0x3b   : > { %1308 = vmatmul.mubr.msk.bf16.gmra.mrb[12].mxu0 %vm474_vm0, %v1230_v58  ;;  %v1707_v58 = vld [vmem:[%s1865_s6] ss:$0 sm:$0xff] }
  0xf6   : > { %v1297_v3 = vpop.f32.mrb[0].mxu0 }
  0xf7   : > { %v533_v4 = vpop.f32.mrb[1].mxu0 }
  0xf8   : > { %v1298_v6 = vpop.f32.mrb[2].mxu0 }
  0xf9   : > { %v597_v7 = vpack.c.bf16 %v1298_v6, %v1297_v3  ;;  %v536_v8 = vpop.f32.mrb[3].mxu0 }
  0xfa   : > { %v596_v9 = vpack.c.bf16 %v536_v8, %v533_v4 }
  0xfb   : > { %v613_v10 = vadd.bf16 %v611_v5, %v597_v7 }
  0xfc   : > { %v612_v11 = vadd.bf16 %v611_v5, %v596_v9 }
  0xfd   : > { %v621_v14 = vmax.bf16 %v1505_v61, %v613_v10 }
  0xfe   : > { %v1301_v12 = vpop.f32.mrb[4].mxu0  ;;  %v620_v13 = vmax.bf16 %v1505_v61, %v612_v11 }
  0xff   : > { %v549_v15 = vpop.f32.mrb[5].mxu0 }
 0x100   : > { %v1302_v16 = vpop.f32.mrb[6].mxu0  ;;  %1315 = vmatprep.mubr.msk.bf16.mxu1 %vm474_vm0, %v620_v13 }
 0x101   : > { %v599_v17 = vpack.c.bf16 %v1302_v16, %v1301_v12  ;;  %v552_v18 = vpop.f32.mrb[7].mxu0  ;;  %1316 = vmatmul.mubr.msk.bf16.vlgmr.msra.gmra.mrb[0].mxu1 %vm474_vm0, %v621_v14 }
 0x102   : > { %v598_v19 = vpack.c.bf16 %v552_v18, %v549_v15 }
 0x103   : > { %v615_v20 = vadd.bf16 %v611_v5, %v599_v17 }
 0x104   : > { %v614_v21 = vadd.bf16 %v611_v5, %v598_v19 }
 0x105   : > { %v623_v24 = vmax.bf16 %v1505_v61, %v615_v20 }
 0x106   : > { %v622_v22 = vmax.bf16 %v1505_v61, %v614_v21  ;;  %v1305_v23 = vpop.f32.mrb[8].mxu0 }
 0x107   : > { %v565_v25 = vpop.f32.mrb[9].mxu0 }
 0x108   : > { %1319 = vmatprep.mubr.msk.bf16.mxu1 %vm474_vm0, %v622_v22  ;;  %v1306_v26 = vpop.f32.mrb[10].mxu0 }
 0x109   : > { %1320 = vmatmul.mubr.msk.bf16.gmra.mrb[4].mxu1 %vm474_vm0, %v623_v24  ;;  %v601_v27 = vpack.c.bf16 %v1306_v26, %v1305_v23  ;;  %v568_v28 = vpop.f32.mrb[11].mxu0 }
 0x10a   : > { %v600_v29 = vpack.c.bf16 %v568_v28, %v565_v25 }
 0x10b   : > { %v617_v30 = vadd.bf16 %v611_v5, %v601_v27 }
 0x10c   : > { %v616_v31 = vadd.bf16 %v611_v5, %v600_v29 }
 0x10d   : > { %v625_v32 = vmax.bf16 %v1505_v61, %v617_v30 }
 0x10e   : > { %v624_v33 = vmax.bf16 %v1505_v61, %v616_v31  ;;  %v1309_v34 = vpop.f32.mrb[12].mxu0 }
 0x10f   : > { %v581_v35 = vpop.f32.mrb[13].mxu0 }
 0x110   : > { %1323 = vmatprep.mubr.msk.bf16.mxu1 %vm474_vm0, %v624_v33  ;;  %v1310_v36 = vpop.f32.mrb[14].mxu0 }
 0x111   : > { %1324 = vmatmul.mubr.msk.bf16.gmra.mrb[8].mxu1 %vm474_vm0, %v625_v32  ;;  %v603_v37 = vpack.c.bf16 %v1310_v36, %v1309_v34  ;;  %v584_v38 = vpop.f32.mrb[15].mxu0 }
 0x112   : > { %v602_v39 = vpack.c.bf16 %v584_v38, %v581_v35 }
 0x113   : > { %v619_v40 = vadd.bf16 %v611_v5, %v603_v37 }
 0x114   : > { %v618_v41 = vadd.bf16 %v611_v5, %v602_v39 }
 0x115   : > { %v627_v42 = vmax.bf16 %v1505_v61, %v619_v40 }
 0x116   : > { %v626_v43 = vmax.bf16 %v1505_v61, %v618_v41 }
 0x118   : > { %1327 = vmatprep.mubr.msk.bf16.mxu1 %vm474_vm0, %v626_v43 }
 0x119   : > { %1328 = vmatmul.mubr.msk.bf16.gmra.mrb[12].mxu1 %vm474_vm0, %v627_v42 }
 0x1d4   : > { %v1317_v46 = vpop.f32.mrb[0].mxu1 }
 0x1d5   : > { %v702_v47 = vpop.f32.mrb[1].mxu1 }
 0x1d6   : > { %v1318_v49 = vpop.f32.mrb[2].mxu1 }
 0x1d7   : > { %v766_v50 = vpack.c.bf16 %v1318_v49, %v1317_v46  ;;  %v705_v51 = vpop.f32.mrb[3].mxu1 }
 0x1d8   : > { %v765_v52 = vpack.c.bf16 %v705_v51, %v702_v47 }
 0x1d9   : > { %v782_v53 = vadd.bf16 %v1698_v48, %v766_v50 }
 0x1da   : > { %v781_v54 = vadd.bf16 %v1698_v48, %v765_v52 }
 0x1db   : > { %v790_v55 = vmax.bf16 %v1505_v61, %v782_v53 }
 0x1dc   : > { %v789_v56 = vmax.bf16 %v1505_v61, %v781_v54  ;;  %v1321_v57 = vpop.f32.mrb[4].mxu1 }
 0x1dd   : > { %v718_v59 = vpop.f32.mrb[5].mxu1  ;;  %v799_v60 = vunpack.c.l.bf16 %v790_v55  ;;  %v800_v0 = vunpack.c.h.bf16 %v790_v55 }
 0x1de   : > { %v1322_v1 = vpop.f32.mrb[6].mxu1  ;;  %v797_v3 = vunpack.c.l.bf16 %v789_v56  ;;  %v798_v4 = vunpack.c.h.bf16 %v789_v56 }
 0x1df   : > { %v768_v5 = vpack.c.bf16 %v1322_v1, %v1321_v57  ;;  %v721_v6 = vpop.f32.mrb[7].mxu1  ;;  %v822_v7 = vmul.f32 %v1707_v58, %v799_v60  ;;  %v823_v12 = vmul.f32 %v1707_v58, %v800_v0 }
 0x1e0   : > { %v767_v8 = vpack.c.bf16 %v721_v6, %v718_v59  ;;  %v820_v9 = vmul.f32 %v1707_v58, %v797_v3  ;;  %v821_v15 = vmul.f32 %v1707_v58, %v798_v4  ;;  %v884_v3 = vld [vmem:[#allocation2] sm:$0x1] }
 0x1e1   : > { %v784_v10 = vadd.bf16 %v1698_v48, %v768_v5  ;;  %v842_v11 = vsel %vm474_vm0, %v822_v7, 0.0  ;;  %v845_v19 = vsel %vm474_vm0, %v823_v12, 0.0 }
 0x1e2   : > { %v783_v13 = vadd.bf16 %v1698_v48, %v767_v8  ;;  %843 = vadd.xlane.f32.xlu1 %v842_v11  ;;  %v836_v14 = vsel %vm474_vm0, %v820_v9, 0.0  ;;  %v839_v22 = vsel %vm474_vm0, %v821_v15, 0.0 }
 0x1e3   : > { %v792_v16 = vmax.bf16 %v1505_v61, %v784_v10  ;;  %837 = vadd.xlane.f32.xlu0 %v836_v14 }
 0x1e4   : > { %v791_v17 = vmax.bf16 %v1505_v61, %v783_v13  ;;  %v1325_v18 = vpop.f32.mrb[8].mxu1 }
 0x1e5   : > { %v734_v20 = vpop.f32.mrb[9].mxu1  ;;  %v803_v21 = vunpack.c.l.bf16 %v792_v16  ;;  %v804_v36 = vunpack.c.h.bf16 %v792_v16 }
 0x1e6   : > { %846 = vadd.xlane.f32.xlu1 %v845_v19  ;;  %v802_v23 = vunpack.c.h.bf16 %v791_v17  ;;  %v1326_v24 = vpop.f32.mrb[10].mxu1  ;;  %v801_v25 = vunpack.c.l.bf16 %v791_v17 }
 0x1e7   : > { %840 = vadd.xlane.f32.xlu0 %v839_v22  ;;  %v826_v26 = vmul.f32 %v1707_v58, %v803_v21  ;;  %v770_v27 = vpack.c.bf16 %v1326_v24, %v1325_v18  ;;  %v737_v28 = vpop.f32.mrb[11].mxu1  ;;  %v827_v43 = vmul.f32 %v1707_v58, %v804_v36 }
 0x1e8   : > { %v825_v29 = vmul.f32 %v1707_v58, %v802_v23  ;;  %v769_v30 = vpack.c.bf16 %v737_v28, %v734_v20  ;;  %v824_v34 = vmul.f32 %v1707_v58, %v801_v25 }
 0x1e9   : > { %v854_v31 = vsel %vm474_vm0, %v826_v26, 0.0  ;;  %v786_v32 = vadd.bf16 %v1698_v48, %v770_v27  ;;  %v857_v52 = vsel %vm474_vm0, %v827_v43, 0.0 }
 0x1ea   : > { %v851_v33 = vsel %vm474_vm0, %v825_v29, 0.0  ;;  %v785_v35 = vadd.bf16 %v1698_v48, %v769_v30  ;;  %v848_v42 = vsel %vm474_vm0, %v824_v34, 0.0 }
 0x1eb   : > { %855 = vadd.xlane.f32.xlu0 %v854_v31  ;;  %852 = vadd.xlane.f32.xlu1 %v851_v33  ;;  %v794_v37 = vmax.bf16 %v1505_v61, %v786_v32 }
 0x1ec   : > { %v793_v38 = vmax.bf16 %v1505_v61, %v785_v35  ;;  %v1329_v39 = vpop.f32.mrb[12].mxu1 }
 0x1ed   : > { %v750_v40 = vpop.f32.mrb[13].mxu1  ;;  %v807_v41 = vunpack.c.l.bf16 %v794_v37  ;;  %v808_v14 = vunpack.c.h.bf16 %v794_v37 }
 0x1ee   : > { %v1330_v44 = vpop.f32.mrb[14].mxu1  ;;  %v805_v49 = vunpack.c.l.bf16 %v793_v38  ;;  %v806_v53 = vunpack.c.h.bf16 %v793_v38 }
 0x1ef   : > { %849 = vadd.xlane.f32.xlu0 %v848_v42  ;;  %v772_v45 = vpack.c.bf16 %v1330_v44, %v1329_v39  ;;  %v753_v46 = vpop.f32.mrb[15].mxu1  ;;  %v830_v47 = vmul.f32 %v1707_v58, %v807_v41  ;;  %v831_v15 = vmul.f32 %v1707_v58, %v808_v14 }
 0x1f0   : > { %v771_v50 = vpack.c.bf16 %v753_v46, %v750_v40  ;;  %v828_v56 = vmul.f32 %v1707_v58, %v805_v49  ;;  %v829_v0 = vmul.f32 %v1707_v58, %v806_v53 }
 0x1f1   : > { %v788_v51 = vadd.bf16 %v1698_v48, %v772_v45  ;;  %v866_v54 = vsel %vm474_vm0, %v830_v47, 0.0  ;;  %v869_v16 = vsel %vm474_vm0, %v831_v15, 0.0 }
 0x1f2   : > { %v787_v57 = vadd.bf16 %v1698_v48, %v771_v50  ;;  %v860_v59 = vsel %vm474_vm0, %v828_v56, 0.0  ;;  %v863_v4 = vsel %vm474_vm0, %v829_v0, 0.0  ;;  %v1768_v0 = vand.u32 127, %v608_v62 }
 0x1f3   : > { %858 = vadd.xlane.f32.xlu0 %v857_v52  ;;  %v796_v55 = vmax.bf16 %v1505_v61, %v788_v51 }
 0x1f4   : > { %v795_v60 = vmax.bf16 %v1505_v61, %v787_v57  ;;  %v1035_v14 = vadd.s32 4294967280, %v1768_v0 }
 0x1f5   : > { %v811_v1 = vunpack.c.l.bf16 %v796_v55  ;;  %v812_v10 = vunpack.c.h.bf16 %v796_v55 }
 0x1f6   : > { %v809_v6 = vunpack.c.l.bf16 %v795_v60  ;;  %v810_v8 = vunpack.c.h.bf16 %v795_v60 }
 0x1f7   : > { %867 = vadd.xlane.f32.xlu0 %v866_v54  ;;  %v834_v5 = vmul.f32 %v1707_v58, %v811_v1  ;;  %v835_v12 = vmul.f32 %v1707_v58, %v812_v10 }
 0x1f8   : > { %v832_v48 = vmul.f32 %v1707_v58, %v809_v6  ;;  %v833_v9 = vmul.f32 %v1707_v58, %v810_v8  ;;  %v1028_v8 = vadd.s32 4294967288, %v1768_v0 }
 0x1f9   : > { %v878_v7 = vsel %vm474_vm0, %v834_v5, 0.0  ;;  %v881_v13 = vsel %vm474_vm0, %v835_v12, 0.0 }
 0x1fa   : > { %v872_v61 = vsel %vm474_vm0, %v832_v48, 0.0  ;;  %v875_v11 = vsel %vm474_vm0, %v833_v9, 0.0 }
 0x1fb   : > { %861 = vadd.xlane.f32.xlu0 %v860_v59 }
 0x1fc   : > { %887 = vperm.xlu1 %1371, %v884_v3  }
 0x1ff   : > { %864 = vadd.xlane.f32.xlu0 %v863_v4 }
 0x203   : > { %879 = vadd.xlane.f32.xlu0 %v878_v7 }
 0x207   : > { %873 = vadd.xlane.f32.xlu0 %v872_v61 }
 0x20b   : > { %876 = vadd.xlane.f32.xlu0 %v875_v11 }
 0x20f   : > { %882 = vadd.xlane.f32.xlu0 %v881_v13 }
 0x220   : > { %870 = vadd.xlane.f32.xlu1 %v869_v16 }
 0x26f   : > { %v844_v17 = vpop.xlane.xlu1 %843 }
 0x270   : > { %v838_v18 = vpop.xlane.xlu0 %837 }
 0x273   : > { %v847_v20 = vpop.xlane.xlu1 %846 }
 0x274   : > { %v841_v19 = vpop.xlane.xlu0 %840 }
 0x278   : > { %v856_v21 = vpop.xlane.xlu0 %855  ;;  %v853_v22 = vpop.xlane.xlu1 %852 }
 0x27c   : > { %v850_v23 = vpop.xlane.xlu0 %849  ;;  %v888_v25 = vpop.permute.xlu1 %887 }
 0x27d   : > { %v1754_v27 = vrot.slane %v888_v25, %v1675_v2 }
 0x27f   : > { %v894_v29 = vadd.f32 %v1754_v27, %v838_v18  ;;  %v895_v58 = vadd.f32 %v1754_v27, %v841_v19  ;;  %v896_v30 = vadd.f32 %v1754_v27, %v844_v17  ;;  %v897_v35 = vadd.f32 %v1754_v27, %v847_v20 }
 0x280   : > { %v859_v24 = vpop.xlane.xlu0 %858  ;;  %v898_v2 = vadd.f32 %v1754_v27, %v850_v23  ;;  %v899_v38 = vadd.f32 %v1754_v27, %v853_v22  ;;  %v900_v39 = vadd.f32 %v1754_v27, %v856_v21  ;;  %v1026_v17 = vsub.s32 %v1768_v0, %v1669_v63 }
 0x281   : > { %v1252_v31 = vmul.f32 -1.442695, %v894_v29  ;;  %v1253_v33 = vmul.f32 -1.442695, %v895_v58  ;;  %v1254_v34 = vmul.f32 -1.442695, %v896_v30  ;;  %v901_v41 = vadd.f32 %v1754_v27, %v859_v24 }
 0x282   : > { %v1255_v37 = vmul.f32 -1.442695, %v897_v35  ;;  %v1256_v40 = vmul.f32 -1.442695, %v898_v2  ;;  %v1257_v44 = vmul.f32 -1.442695, %v899_v38  ;;  %v1031_v18 = vsub.s32 %v1028_v8, %v1669_v63 }
 0x283   : > { %1377 = vpow2.f32 %v1252_v31  ;;  %v1258_v46 = vmul.f32 -1.442695, %v900_v39  ;;  %v1259_v49 = vmul.f32 -1.442695, %v901_v41  ;;  %v1056_v41 = vadd.s32 4294967256, %v1768_v0 }
 0x284   : > { %v868_v26 = vpop.xlane.xlu0 %867  ;;  %1379 = vpow2.f32 %v1253_v33 }
 0x285   : > { %1381 = vpow2.f32 %v1254_v34  ;;  %v904_v57 = vadd.f32 %v1754_v27, %v868_v26  ;;  %v1038_v26 = vsub.s32 %v1035_v14, %v1669_v63 }
 0x286   : > { %1383 = vpow2.f32 %v1255_v37 }
 0x287   : > { %1385 = vpow2.f32 %v1256_v40  ;;  %v1262_v5 = vmul.f32 -1.442695, %v904_v57 }
 0x288   : > { %v862_v28 = vpop.xlane.xlu0 %861  ;;  %1387 = vpow2.f32 %v1257_v44 }
 0x289   : > { %v902_v47 = vadd.f32 %v1754_v27, %v862_v28  ;;  %1389 = vpow2.f32 %v1258_v46  ;;  %v1042_v28 = vadd.s32 4294967272, %v1768_v0 }
 0x28a   : > { %1391 = vpow2.f32 %v1259_v49 }
 0x28b   : > { %v1260_v55 = vmul.f32 -1.442695, %v902_v47  ;;  %v1045_v38 = vsub.s32 %v1042_v28, %v1669_v63  ;;  %v1063_v47 = vadd.s32 4294967248, %v1768_v0 }
 0x28c   : > { %v865_v32 = vpop.xlane.xlu0 %864 }
 0x28d   : > { %v1378_v43 = vpop.eup %1377  ;;  %v903_v52 = vadd.f32 %v1754_v27, %v865_v32 }
 0x28e   : > { %v1380_v45 = vpop.eup %1379  ;;  %v958_v51 = vadd.f32 1.0, %v1378_v43 }
 0x28f   : > { %v1382_v50 = vpop.eup %1381  ;;  %v959_v53 = vadd.f32 1.0, %v1380_v45  ;;  %v1261_v59 = vmul.f32 -1.442695, %v903_v52 }
 0x290   : > { %v880_v36 = vpop.xlane.xlu0 %879  ;;  %v960_v56 = vadd.f32 1.0, %v1382_v50  ;;  %1393 = vrcp.f32 %v958_v51  ;;  %v1384_v60 = vpop.eup %1383 }
 0x291   : > { %1395 = vrcp.f32 %v959_v53  ;;  %v1386_v6 = vpop.eup %1385  ;;  %v961_v7 = vadd.f32 1.0, %v1384_v60  ;;  %v908_v48 = vadd.f32 %v1754_v27, %v880_v36  ;;  %v1077_v60 = vadd.s32 4294967232, %v1768_v0 }
 0x292   : > { %1397 = vpow2.f32 %v1260_v55  ;;  %v1388_v62 = vpop.eup %1387  ;;  %v962_v12 = vadd.f32 1.0, %v1386_v6 }
 0x293   : > { %1399 = vrcp.f32 %v960_v56  ;;  %v1390_v11 = vpop.eup %1389  ;;  %v1266_v15 = vmul.f32 -1.442695, %v908_v48  ;;  %v963_v21 = vadd.f32 1.0, %v1388_v62 }
 0x294   : > { %v874_v42 = vpop.xlane.xlu0 %873  ;;  %1401 = vpow2.f32 %v1261_v59  ;;  %v1392_v13 = vpop.eup %1391  ;;  %v964_v29 = vadd.f32 1.0, %v1390_v11  ;;  %v1070_v59 = vadd.s32 4294967240, %v1768_v0 }
 0x295   : > { %v906_v1 = vadd.f32 %v1754_v27, %v874_v42  ;;  %1403 = vpow2.f32 %v1262_v5  ;;  %v965_v33 = vadd.f32 1.0, %v1392_v13 }
 0x296   : > { %1405 = vrcp.f32 %v961_v7  ;;  %v1073_v62 = vsub.s32 %v1070_v59, %v1669_v63 }
 0x297   : > { %v1264_v61 = vmul.f32 -1.442695, %v906_v1 }
 0x298   : > { %v877_v54 = vpop.xlane.xlu0 %876 }
 0x299   : > { %v907_v3 = vadd.f32 %v1754_v27, %v877_v54  ;;  %1407 = vpow2.f32 %v1264_v61  ;;  %v1059_v54 = vsub.s32 %v1056_v41, %v1669_v63 }
 0x29a   : > { %v1394_v16 = vpop.eup %1393 }
 0x29b   : > { %v1265_v10 = vmul.f32 -1.442695, %v907_v3  ;;  %v1396_v20 = vpop.eup %1395  ;;  %v1027_v30 = vrot.slane %v1394_v16, %v1026_v17  ;;  %v1066_v3 = vsub.s32 %v1063_v47, %v1669_v63  ;;  %v1091_v16 = vadd.s32 4294967216, %v1768_v0 }
 0x29c   : > { %v883_v4 = vpop.xlane.xlu0 %882  ;;  %v1398_v23 = vpop.eup %1397  ;;  %v1032_v31 = vrot.slane %v1396_v20, %v1031_v18  ;;  %v1098_v17 = vadd.s32 4294967208, %v1768_v0  ;;  %v1105_v20 = vadd.s32 4294967200, %v1768_v0 }
 0x29d   : > { %v909_v9 = vadd.f32 %v1754_v27, %v883_v4  ;;  %1409 = vpow2.f32 %v1265_v10  ;;  %v1400_v25 = vpop.eup %1399  ;;  %v966_v34 = vadd.f32 1.0, %v1398_v23  ;;  %v1084_v4 = vadd.s32 4294967224, %v1768_v0 }
 0x29e   : > { %1411 = vrcp.f32 %v962_v12  ;;  %v1402_v58 = vpop.eup %1401  ;;  %v1039_v35 = vrot.slane %v1400_v25, %v1038_v26  ;;  %v1034_v37 = vsel %vm1033_vm1, %v1032_v31, %v1027_v30  ;;  %v1080_v10 = vsub.s32 %v1077_v60, %v1669_v63 }
 0x29f   : > { %v1267_v19 = vmul.f32 -1.442695, %v909_v9  ;;  %1413 = vpow2.f32 %v1266_v15  ;;  %v967_v36 = vadd.f32 1.0, %v1402_v58  ;;  %v1404_v2 = vpop.eup %1403  ;;  %v1087_v13 = vsub.s32 %v1084_v4, %v1669_v63 }
 0x2a0   : > { %v1406_v39 = vpop.eup %1405  ;;  %v1041_v43 = vsel %vm1040_vm2, %v1039_v35, %v1034_v37  ;;  %v968_v49 = vadd.f32 1.0, %v1404_v2  ;;  %v1112_v23 = vadd.s32 4294967192, %v1768_v0  ;;  %v1119_v25 = vadd.s32 4294967184, %v1768_v0 }
 0x2a1   : > { %1415 = vpow2.f32 %v1267_v19  ;;  %v1046_v46 = vrot.slane %v1406_v39, %v1045_v38  ;;  %v1126_v58 = vadd.s32 4294967176, %v1768_v0 }
 0x2a2   : > { %1417 = vrcp.f32 %v963_v21  ;;  %v1115_v35 = vsub.s32 %v1112_v23, %v1669_v63  ;;  %v1122_v2 = vsub.s32 %v1119_v25, %v1669_v63 }
 0x2a3   : > { %v1408_v40 = vpop.eup %1407  ;;  %v1048_v53 = vsel %vm1047_vm3, %v1046_v46, %v1041_v43 }
 0x2a4   : > { %v970_v51 = vadd.f32 1.0, %v1408_v40 }
 0x2a7   : > { %v1410_v42 = vpop.eup %1409 }
 0x2a8   : > { %v1412_v45 = vpop.eup %1411  ;;  %v971_v55 = vadd.f32 1.0, %v1410_v42 }
 0x2a9   : > { %v1414_v50 = vpop.eup %1413 }
 0x2aa   : > { %v972_v5 = vadd.f32 1.0, %v1414_v50 }
 0x2ab   : > { %v1416_v52 = vpop.eup %1415 }
 0x2ac   : > { %v1418_v56 = vpop.eup %1417  ;;  %v973_v7 = vadd.f32 1.0, %v1416_v52 }
 0x2ad   : > { %v871_v22 = vpop.xlane.xlu1 %870  ;;  %v1060_v61 = vrot.slane %v1418_v56, %v1059_v54 }
 0x2ae   : > { %v905_v24 = vadd.f32 %v1754_v27, %v871_v22  ;;  %v1049_v27 = vadd.s32 4294967264, %v1768_v0  ;;  %v1129_v0 = vsub.s32 %v1126_v58, %v1669_v63 }
 0x2b0   : > { %v1263_v32 = vmul.f32 -1.442695, %v905_v24  ;;  %v1052_v44 = vsub.s32 %v1049_v27, %v1669_v63  ;;  %v1094_v24 = vsub.s32 %v1091_v16, %v1669_v63 }
 0x2b2   : > { %1419 = vpow2.f32 %v1263_v32  ;;  %v1053_v57 = vrot.slane %v1412_v45, %v1052_v44  ;;  %v1108_v32 = vsub.s32 %v1105_v20, %v1669_v63 }
 0x2b3   : > { %1421 = vrcp.f32 %v964_v29  ;;  %v1101_v29 = vsub.s32 %v1098_v17, %v1669_v63 }
 0x2b4   : > { %1423 = vrcp.f32 %v965_v33  ;;  %v1055_v6 = vsel %vm1054_vm4, %v1053_v57, %v1048_v53 }
 0x2b5   : > { %1425 = vrcp.f32 %v966_v34  ;;  %v1062_v12 = vsel %vm1061_vm5, %v1060_v61, %v1055_v6 }
 0x2b6   : > { %1427 = vrcp.f32 %v967_v36 }
 0x2b7   : > { %1429 = vrcp.f32 %v968_v49 }
 0x2b8   : > { %1431 = vrcp.f32 %v970_v51 }
 0x2b9   : > { %1433 = vrcp.f32 %v971_v55 }
 0x2bc   : > { %v1420_v1 = vpop.eup %1419 }
 0x2bd   : > { %v969_v48 = vadd.f32 1.0, %v1420_v1  ;;  %v1422_v8 = vpop.eup %1421 }
 0x2be   : > { %v1424_v9 = vpop.eup %1423  ;;  %v1067_v15 = vrot.slane %v1422_v8, %v1066_v3 }
 0x2bf   : > { %1435 = vrcp.f32 %v969_v48  ;;  %v1426_v11 = vpop.eup %1425  ;;  %v1074_v21 = vrot.slane %v1424_v9, %v1073_v62 }
 0x2c0   : > { %1437 = vrcp.f32 %v972_v5  ;;  %v1428_v14 = vpop.eup %1427  ;;  %v1069_v18 = vsel %vm1068_vm6, %v1067_v15, %v1062_v12  ;;  %v1081_v19 = vrot.slane %v1426_v11, %v1080_v10 }
 0x2c1   : > { %1439 = vrcp.f32 %v973_v7  ;;  %v1088_v22 = vrot.slane %v1428_v14, %v1087_v13  ;;  %v1430_v26 = vpop.eup %1429  ;;  %v1076_v28 = vsel %vm1075_vm7, %v1074_v21, %v1069_v18 }
 0x2c2   : > { %v1432_v30 = vpop.eup %1431  ;;  %v1083_v31 = vsel %vm1082_vm8, %v1081_v19, %v1076_v28  ;;  %v1095_v36 = vrot.slane %v1430_v26, %v1094_v24 }
 0x2c3   : > { %v1434_v33 = vpop.eup %1433  ;;  %v1090_v34 = vsel %vm1089_vm9, %v1088_v22, %v1083_v31  ;;  %v1109_v41 = vrot.slane %v1432_v30, %v1108_v32 }
 0x2c4   : > { %v1097_v40 = vsel %vm1096_vm10, %v1095_v36, %v1090_v34  ;;  %v1116_v43 = vrot.slane %v1434_v33, %v1115_v35 }
 0x2c9   : > { %v1436_v27 = vpop.eup %1435 }
 0x2ca   : > { %v1438_v37 = vpop.eup %1437  ;;  %v1102_v38 = vrot.slane %v1436_v27, %v1101_v29 }
 0x2cb   : > { %v1440_v39 = vpop.eup %1439  ;;  %v1123_v45 = vrot.slane %v1438_v37, %v1122_v2 }
 0x2cc   : > { %v1104_v42 = vsel %vm1103_vm11, %v1102_v38, %v1097_v40  ;;  %v1130_v47 = vrot.slane %v1440_v39, %v1129_v0 }
 0x2cd   : > { %v1111_v44 = vsel %vm1110_vm12, %v1109_v41, %v1104_v42 }
 0x2ce   : > { %v1118_v46 = vsel %vm1117_vm13, %v1116_v43, %v1111_v44 }
 0x2cf   : > { %v1125_v49 = vsel %vm1124_vm14, %v1123_v45, %v1118_v46 }
 0x2d0   : > { %v1132_v63 = vsel %vm1131_vm15, %v1130_v47, %v1125_v49 }
 0x2d1   : > { %1134 = vst [vmem:[%s340_s28] sm:$0x1] %v1132_v63 }
 0x2d2   : > { %1454 = shalt.err (!%p1451_p3)
}
 0x2d3   : > { %s1455_s20 = scalar_lea.hbm %s1815_s14, 16  ;;  %s1459_s26 = scalar_lea.hbm %s1867_s8, 64 }
 0x2d4   : > { %p1456_p4 = scmp.ne.s32.totalorder %s1815_s14, %s1455_s20  ;;  %p1460_p9 = scmp.lt.u32.totalorder %s1815_s14, %s1867_s8 }
 0x2d5   : > { %p1461_p10 = scmp.lt.u32.totalorder %s1459_s26, %s1455_s20  ;;  %p1463_p12 = scmp.lt.u32.totalorder %s1455_s20, %s1815_s14 }
 0x2d6   : > { %p1457_p7 = pnand %p1456_p4, %p1590_p5 }
 0x2d7   : > { %p1462_p11 = por %p1461_p10, %p1460_p9 }
 0x2d8   : > { %p1458_p8 = pneg %p1457_p7 }
 0x2d9   : > { %p1464_p13 = por %p1463_p12, %p1462_p11 }
 0x2db   : > { %p1465_p0 = pnand %p1464_p13, %p1458_p8 }
 0x2dd   : > { %1468 = shalt.err (!%p1465_p0)
}
 0x2de   : > { %1331 = dma.vmem_to_hbm [thread:$0]  (%p1590_p5), %s1817_s7, 16, %s1815_s14, %s1136_s18  }
 0x2df PF: > { %p1337_p1 = scmp.ge.s32.totalorder %s1503_s10, 2  ;;  %s1160_s11 = sand.u32 1, %s1491_s29  }
 0x2e0   : > { %s1161_s13 = scalar_lea.sflag [#allocation4], %s1160_s11 }
 0x2e1   : > { %p1334_p2 = pnand %p1337_p1, %p1594_p6 }
 0x2e3   : > { %1486 = dma.done.wait (!%p1334_p2), %s1161_s13, 16  }
 0x2e4   : > { %1488 = vsyncadd (!%p1334_p2), %s1161_s13, 4294967280  ;;  %p20_p3 = scmp.ge.s32.totalorder %s1578_s12, 6   ;;  %s1870_s29 = smov %s1495_s30 }
 0x2e5   : > { %s1871_s30 = smov %s1499_s9  ;;  %s1872_s9 = smov %s1588_s15 }
 0x2e6   : > { %s1873_s10 = smov %s1578_s12  ;;  %22 = sbr.rel (!%p20_p3) target bundleno = 6 (0x6), region = 90 }
 0x2ed   :  { %1165 = vsyncpa [#allocation4], 1 }
 0x2ee   :  { %1167 = vsyncpa [#allocation4 + $0x1], 1 }

// kernel: tpu_custom_call.1
= control target key start
LH: loop header
LB: loop body
LE: loop exit
PB: predicated region body
PF: predicated region fallthrough
CT: control target
= control target key end

     0   :  { %s1859_s0 = inlined_call_operand.vmem [shape: bf16[500,32], index: 0, kind: input, shape index: {}]   ;;  %s1860_s1 = inlined_call_operand.vmem [shape: bf16[500,32], index: 1, kind: input, shape index: {}]   ;;  %s1861_s2 = inlined_call_operand.vmem [shape: bf16[32,32], index: 2, kind: input, shape index: {}]   ;;  %s1862_s3 = inlined_call_operand.vmem [shape: bf16[1,32], index: 3, kind: input, shape index: {}]   ;;  %s1863_s4 = inlined_call_operand.vmem [shape: bf16[32,32], index: 4, kind: input, shape index: {}]   ;;  %s1864_s5 = inlined_call_operand.vmem [shape: bf16[1,32], index: 5, kind: input, shape index: {}]   ;;  %s1865_s6 = inlined_call_operand.vmem [shape: f32[1,32], index: 6, kind: input, shape index: {}]   ;;  %s1866_s7 = inlined_call_operand.<no memory space> [shape: f32[1,1], index: 7, kind: input, shape index: {}]   ;;  %s1867_s8 = inlined_call_operand.hbm [shape: f32[4,1,128], index: 8, kind: output, shape index: {}]  }
   0x1   :  { %v13_v0 = vstv %s1866_s7 }
   0x2   :  { %14 = vst [vmem:[#allocation2] sm:$0x1] %v13_v0 }
   0x3   :  { %15 = vsyncpa [#allocation4], 0 }
   0x4   :  { %17 = vsyncpa [#allocation4 + $0x1], 0  ;;  %s1555_s29 = smov 0   ;;  %s1557_s30 = smov 0  }
   0x5   :  { %s1559_s9 = smov 0   ;;  %s1561_s10 = smov 0  }
   0x6 LB: > { %s1214_s7 = sadd.s32 4294967295, %s1503_s10   ;;  %s1215_s11 = sadd.s32 4294967294, %s1503_s10   ;;  %s1503_s10 = sphi %s1561_s10, %s1873_s10   ;;  %s1499_s9 = sphi %s1559_s9, %s1872_s9   ;;  %s1495_s30 = sphi %s1557_s30, %s1871_s30   ;;  %s1491_s29 = sphi %s1555_s29, %s1870_s29  }
   0x7   : > { %s1578_s12 = sadd.s32 1, %s1503_s10   ;;  %s208_s13 = sadd.s32 1, %s1499_s9 }
   0x8   : > { %s205_s14 = ssub.s32 %s1503_s10, %s1578_s12  ;;  %p218_p0 = scmp.ne.s32.totalorder %s1499_s9, %s1495_s30 }
   0x9   : > { %p206_p1 = scmp.eq.s32.totalorder %s205_s14, 0  ;;  %p219_p2 = scmp.eq.s32.totalorder %s1214_s7, 3 }
   0xa   : > { %p224_p3 = scmp.ne.s32.totalorder %s1495_s30, %s1491_s29  ;;  %p225_p4 = scmp.eq.s32.totalorder %s1215_s11, 3 }
   0xb   : > { %s1588_s15 = scalar_select %p206_p1, %s1499_s9, %s208_s13  }
   0xc   : > { %p1590_p5 = por %p219_p2, %p218_p0  ;;  %p1594_p6 = por %p225_p4, %p224_p3 }
   0xd   : > { %p1218_p7 = scmp.ge.s32.totalorder %s1503_s10, 1  ;;  %p295_p8 = scmp.lt.s32.totalorder %s1503_s10, 5 }
   0xf   : > { %p296_p9 = pnand %p1218_p7, %p295_p8 }
  0x10   : > { %v1373_v1 = vld [vmem:[%s1861_s2] sm:$0xff] (!%p296_p9)   ;;  %s1603_s20 = sshll.u32 (!%p296_p9), %s1214_s7, 4  ;;  %v1374_v2 = vld [vmem:[%s1861_s2 + $0x8] sm:$0xff] (!%p296_p9)   ;;  %vm474_vm0 = vcmask (!%p296_p9), 261120   ;;  %v1505_v61 = vmov (!%p296_p9), 0   ;;  %v608_v62 = vlaneseq (!%p296_p9)  ;;  %vm1033_vm1 = vcmask (!%p296_p9), 130112  }
  0x11   : > { %299 = sbr.rel (%p296_p9) target bundleno = 735 (0x2df), region = 52  ;;  %p346_p10 = scmp.lt.s32.totalorder (!%p296_p9), %s1603_s20, 62  ;;  %1291 = vmatprep.subr.bf16.mxu0 (!%p296_p9), %v1373_v1  ;;  %v1375_v59 = vld [vmem:[%s1863_s4] sm:$0xff] (!%p296_p9)   ;;  %v1376_v60 = vld [vmem:[%s1863_s4 + $0x8] sm:$0xff] (!%p296_p9)   ;;  %1371 = vset.pattern.permute.xlu1 (!%p296_p9), %v1505_v61  ;;  %vm1040_vm2 = vcmask (!%p296_p9), 195712   ;;  %vm1047_vm3 = vcmask (!%p296_p9), 261312  }
  0x12   : > { %1292 = vmatpush3.bf16.msra.mxu0 (!%p296_p9), %v1373_v1  ;;  %1311 = vmatprep.subr.bf16.mxu1 (!%p296_p9), %v1375_v59  ;;  %v1669_v63 = vshrl.u32 (!%p296_p9), %v608_v62, 7  ;;  %v604_v0 = vld [vmem:[%s1862_s3] sm:$0x1] (!%p296_p9)  ;;  %vm1054_vm4 = vcmask (!%p296_p9), 326912   ;;  %vm1061_vm5 = vcmask (!%p296_p9), 392512   ;;  %vm1068_vm6 = vcmask (!%p296_p9), 458112   ;;  %s1815_s14 = scalar_lea.hbm (!%p296_p9), %s1867_s8, %s1603_s20 }
  0x13   : > { %1293 = vmatprep.subr.bf16.mxu0 (!%p296_p9), %v1374_v2  ;;  %1312 = vmatpush3.bf16.msra.mxu1 (!%p296_p9), %v1375_v59  ;;  %v606_v1 = vpack.i.b16 (!%p296_p9), %v604_v0, %v604_v0  ;;  %vm1075_vm7 = vcmask (!%p296_p9), 523712   ;;  %vm1082_vm8 = vcmask (!%p296_p9), 589312   ;;  %vm1089_vm9 = vcmask (!%p296_p9), 654912   ;;  %s1506_s21 = smov (!%p296_p9), [#allocation3]  }
  0x14   : > { %1372 = vset.pattern.permute.xlu0 (!%p296_p9), %v1505_v61  ;;  %1313 = vmatprep.subr.bf16.mxu1 (!%p296_p9), %v1376_v60  ;;  %vm1096_vm10 = vcmask (!%p296_p9), 720512   ;;  %vm1103_vm11 = vcmask (!%p296_p9), 786112   ;;  %vm1110_vm12 = vcmask (!%p296_p9), 851712   ;;  %vm1117_vm13 = vcmask (!%p296_p9), 917312   ;;  %s1445_s22 = sshll.u32 (!%p296_p9), %s1506_s21, 4  ;;  %s1446_s22 = int_to_ptr.vmem [resolvable:$false] %s1445_s22 }
  0x15   : > { %vm1124_vm14 = vcmask (!%p296_p9), 982912   ;;  %vm1131_vm15 = vcmask (!%p296_p9), 1048512  }
  0x16   : > { %1294 = vmatpush3.bf16.msra.mxu0 (!%p296_p9), %v1374_v2  ;;  %v1675_v2 = vsub.s32 (!%p296_p9), 0, %v1669_v63 }
  0x17   : > { %1314 = vmatpush3.bf16.msra.mxu1 (!%p296_p9), %v1376_v60 }
  0x18   : > { %s347_s23 = scalar_select %p346_p10, %s1603_s20, 62 }
  0x1a   : > { %s1220_s24 = sshll.u32 %s347_s23, 2  ;;  %s1447_s23 = scalar_lea.vmem %s1446_s22, 32 }
  0x1b   : > { %s1613_s27 = scalar_lea.vmem %s1859_s0, %s1220_s24  ;;  %s1618_s11 = scalar_lea.vmem %s1860_s1, %s1220_s24 }
  0x1c   : > { %v370_v3 = vld [vmem:[%s1613_s27] sm:$0xf]  ;;  %v371_v4 = vld [vmem:[%s1613_s27 + $0x4] sm:$0xf]  ;;  %v372_v8 = vld [vmem:[%s1613_s27 + $0x8] sm:$0xf] }
  0x1d   : > { %v386_v5 = vld [vmem:[%s1618_s11] sm:$0xf]  ;;  %v387_v6 = vld [vmem:[%s1618_s11 + $0x4] sm:$0xf]  ;;  %v373_v9 = vld [vmem:[%s1613_s27 + $0xc] sm:$0xf] }
  0x1e   : > { %v402_v7 = vmul.bf16 %v386_v5, %v370_v3  ;;  %v403_v10 = vmul.bf16 %v387_v6, %v371_v4  ;;  %v388_v11 = vld [vmem:[%s1618_s11 + $0x8] sm:$0xf]  ;;  %v389_v12 = vld [vmem:[%s1618_s11 + $0xc] sm:$0xf]  ;;  %v374_v13 = vld [vmem:[%s1613_s27 + $0x10] sm:$0xf]  ;;  %v611_v5 = vrot.slane %v606_v1, %v1675_v2 }
  0x1f   : > { %v404_v14 = vmul.bf16 %v388_v11, %v372_v8  ;;  %v405_v15 = vmul.bf16 %v389_v12, %v373_v9  ;;  %v375_v16 = vld [vmem:[%s1613_s27 + $0x14] sm:$0xf]  ;;  %v390_v17 = vld [vmem:[%s1618_s11 + $0x10] sm:$0xf]  ;;  %v376_v22 = vld [vmem:[%s1613_s27 + $0x18] sm:$0xf] }
  0x20   : > { %v391_v18 = vld [vmem:[%s1618_s11 + $0x14] sm:$0xf]  ;;  %v1223_v19 = vcombine.low %v402_v7, %v403_v10  ;;  %v406_v20 = vmul.bf16 %v390_v17, %v374_v13  ;;  %v377_v23 = vld [vmem:[%s1613_s27 + $0x1c] sm:$0xf]  ;;  %v392_v24 = vld [vmem:[%s1618_s11 + $0x18] sm:$0xf] }
  0x21   : > { %v407_v21 = vmul.bf16 %v391_v18, %v375_v16  ;;  %v1224_v25 = vcombine.low %v404_v14, %v405_v15  ;;  %v393_v26 = vld [vmem:[%s1618_s11 + $0x1c] sm:$0xf]  ;;  %v378_v27 = vld [vmem:[%s1613_s27 + $0x20] sm:$0xf]  ;;  %v379_v28 = vld [vmem:[%s1613_s27 + $0x24] sm:$0xf]  ;;  %v408_v32 = vmul.bf16 %v392_v24, %v376_v22 }
  0x22   : > { %1295 = vmatprep.mubr.msk.bf16.mxu0 %vm474_vm0, %v1223_v19  ;;  %v394_v30 = vld [vmem:[%s1618_s11 + $0x20] sm:$0xf]  ;;  %v395_v31 = vld [vmem:[%s1618_s11 + $0x24] sm:$0xf]  ;;  %v409_v33 = vmul.bf16 %v393_v26, %v377_v23  ;;  %v380_v37 = vld [vmem:[%s1613_s27 + $0x28] sm:$0xf] }
  0x23   : > { %v1225_v29 = vcombine.low %v406_v20, %v407_v21  ;;  %1296 = vmatmul.mubr.msk.bf16.vlgmr.msra.gmra.mrb[0].mxu0 %vm474_vm0, %v1224_v25  ;;  %v410_v34 = vmul.bf16 %v394_v30, %v378_v27  ;;  %v411_v35 = vmul.bf16 %v395_v31, %v379_v28  ;;  %v381_v38 = vld [vmem:[%s1613_s27 + $0x2c] sm:$0xf]  ;;  %v396_v40 = vld [vmem:[%s1618_s11 + $0x28] sm:$0xf]  ;;  %v382_v42 = vld [vmem:[%s1613_s27 + $0x30] sm:$0xf] }
  0x24   : > { %v1226_v36 = vcombine.low %v408_v32, %v409_v33  ;;  %v397_v41 = vld [vmem:[%s1618_s11 + $0x2c] sm:$0xf]  ;;  %v383_v43 = vld [vmem:[%s1613_s27 + $0x34] sm:$0xf]  ;;  %v398_v44 = vld [vmem:[%s1618_s11 + $0x30] sm:$0xf]  ;;  %v412_v46 = vmul.bf16 %v396_v40, %v380_v37 }
  0x25   : > { %1299 = vmatprep.mubr.msk.bf16.mxu0 %vm474_vm0, %v1225_v29  ;;  %v1227_v39 = vcombine.low %v410_v34, %v411_v35  ;;  %v399_v45 = vld [vmem:[%s1618_s11 + $0x34] sm:$0xf]  ;;  %v413_v47 = vmul.bf16 %v397_v41, %v381_v38  ;;  %v414_v48 = vmul.bf16 %v398_v44, %v382_v42  ;;  %v384_v51 = vld [vmem:[%s1613_s27 + $0x38] sm:$0xf]  ;;  %v385_v53 = vld [vmem:[%s1613_s27 + $0x3c] sm:$0xf] }
  0x26   : > { %v415_v49 = vmul.bf16 %v399_v45, %v383_v43  ;;  %v400_v54 = vld [vmem:[%s1618_s11 + $0x38] sm:$0xf]  ;;  %v401_v55 = vld [vmem:[%s1618_s11 + $0x3c] sm:$0xf]  ;;  %v773_v44 = vld [vmem:[%s1864_s5] sm:$0x1] }
  0x27   : > { %v1228_v50 = vcombine.low %v412_v46, %v413_v47  ;;  %v416_v56 = vmul.bf16 %v400_v54, %v384_v51  ;;  %v417_v57 = vmul.bf16 %v401_v55, %v385_v53  ;;  %v775_v45 = vpack.i.b16 %v773_v44, %v773_v44  ;;  %s339_s27 = sand.u32 1, %s1495_s30  }
  0x28   : > { %v1229_v52 = vcombine.low %v414_v48, %v415_v49  ;;  %s340_s28 = scalar_lea.vmem [#allocation3], %s339_s27  ;;  %s1136_s18 = scalar_lea.sflag [#allocation4], %s339_s27 }
  0x29   : > { %v1230_v58 = vcombine.low %v416_v56, %v417_v57  ;;  %v1698_v48 = vrot.slane %v775_v45, %v1675_v2  ;;  %s1148_s7 = sshll.u32 %s340_s28, 4  ;;  %s1817_s7 = int_to_ptr.vmem [resolvable:$true] %s1148_s7 }
  0x2a   : > { %s1441_s19 = scalar_lea.vmem %s1817_s7, 16  ;;  %p1448_p0 = scmp.lt.s32.totalorder %s1817_s7, %s1446_s22 }
  0x2b   : > { %1300 = vmatmul.mubr.msk.bf16.gmra.mrb[4].mxu0 %vm474_vm0, %v1226_v36  ;;  %p1442_p11 = scmp.ne.s32.totalorder %s1817_s7, %s1441_s19  ;;  %p1449_p1 = scmp.lt.s32.totalorder %s1447_s23, %s1441_s19 }
  0x2c   : > { %1303 = vmatprep.mubr.msk.bf16.mxu0 %vm474_vm0, %v1227_v39 }
  0x2d   : > { %p1443_p12 = pnand %p1442_p11, %p1590_p5  ;;  %p1450_p2 = por %p1449_p1, %p1448_p0 }
  0x2f   : > { %p1444_p13 = pneg %p1443_p12 }
  0x31   : > { %p1451_p3 = pnand %p1450_p2, %p1444_p13 }
  0x33   : > { %1304 = vmatmul.mubr.msk.bf16.gmra.mrb[8].mxu0 %vm474_vm0, %v1228_v50 }
  0x34   : > { %1307 = vmatprep.mubr.msk.bf16.mxu0 %vm474_vm0, %v1229_v52 }
  0x3b   : > { %1308 = vmatmul.mubr.msk.bf16.gmra.mrb[12].mxu0 %vm474_vm0, %v1230_v58  ;;  %v1707_v58 = vld [vmem:[%s1865_s6] ss:$0 sm:$0xff] }
  0xf6   : > { %v1297_v3 = vpop.f32.mrb[0].mxu0 }
  0xf7   : > { %v533_v4 = vpop.f32.mrb[1].mxu0 }
  0xf8   : > { %v1298_v6 = vpop.f32.mrb[2].mxu0 }
  0xf9   : > { %v597_v7 = vpack.c.bf16 %v1298_v6, %v1297_v3  ;;  %v536_v8 = vpop.f32.mrb[3].mxu0 }
  0xfa   : > { %v596_v9 = vpack.c.bf16 %v536_v8, %v533_v4 }
  0xfb   : > { %v613_v10 = vadd.bf16 %v611_v5, %v597_v7 }
  0xfc   : > { %v612_v11 = vadd.bf16 %v611_v5, %v596_v9 }
  0xfd   : > { %v621_v14 = vmax.bf16 %v1505_v61, %v613_v10 }
  0xfe   : > { %v1301_v12 = vpop.f32.mrb[4].mxu0  ;;  %v620_v13 = vmax.bf16 %v1505_v61, %v612_v11 }
  0xff   : > { %v549_v15 = vpop.f32.mrb[5].mxu0 }
 0x100   : > { %v1302_v16 = vpop.f32.mrb[6].mxu0  ;;  %1315 = vmatprep.mubr.msk.bf16.mxu1 %vm474_vm0, %v620_v13 }
 0x101   : > { %v599_v17 = vpack.c.bf16 %v1302_v16, %v1301_v12  ;;  %v552_v18 = vpop.f32.mrb[7].mxu0  ;;  %1316 = vmatmul.mubr.msk.bf16.vlgmr.msra.gmra.mrb[0].mxu1 %vm474_vm0, %v621_v14 }
 0x102   : > { %v598_v19 = vpack.c.bf16 %v552_v18, %v549_v15 }
 0x103   : > { %v615_v20 = vadd.bf16 %v611_v5, %v599_v17 }
 0x104   : > { %v614_v21 = vadd.bf16 %v611_v5, %v598_v19 }
 0x105   : > { %v623_v24 = vmax.bf16 %v1505_v61, %v615_v20 }
 0x106   : > { %v622_v22 = vmax.bf16 %v1505_v61, %v614_v21  ;;  %v1305_v23 = vpop.f32.mrb[8].mxu0 }
 0x107   : > { %v565_v25 = vpop.f32.mrb[9].mxu0 }
 0x108   : > { %1319 = vmatprep.mubr.msk.bf16.mxu1 %vm474_vm0, %v622_v22  ;;  %v1306_v26 = vpop.f32.mrb[10].mxu0 }
 0x109   : > { %1320 = vmatmul.mubr.msk.bf16.gmra.mrb[4].mxu1 %vm474_vm0, %v623_v24  ;;  %v601_v27 = vpack.c.bf16 %v1306_v26, %v1305_v23  ;;  %v568_v28 = vpop.f32.mrb[11].mxu0 }
 0x10a   : > { %v600_v29 = vpack.c.bf16 %v568_v28, %v565_v25 }
 0x10b   : > { %v617_v30 = vadd.bf16 %v611_v5, %v601_v27 }
 0x10c   : > { %v616_v31 = vadd.bf16 %v611_v5, %v600_v29 }
 0x10d   : > { %v625_v32 = vmax.bf16 %v1505_v61, %v617_v30 }
 0x10e   : > { %v624_v33 = vmax.bf16 %v1505_v61, %v616_v31  ;;  %v1309_v34 = vpop.f32.mrb[12].mxu0 }
 0x10f   : > { %v581_v35 = vpop.f32.mrb[13].mxu0 }
 0x110   : > { %1323 = vmatprep.mubr.msk.bf16.mxu1 %vm474_vm0, %v624_v33  ;;  %v1310_v36 = vpop.f32.mrb[14].mxu0 }
 0x111   : > { %1324 = vmatmul.mubr.msk.bf16.gmra.mrb[8].mxu1 %vm474_vm0, %v625_v32  ;;  %v603_v37 = vpack.c.bf16 %v1310_v36, %v1309_v34  ;;  %v584_v38 = vpop.f32.mrb[15].mxu0 }
 0x112   : > { %v602_v39 = vpack.c.bf16 %v584_v38, %v581_v35 }
 0x113   : > { %v619_v40 = vadd.bf16 %v611_v5, %v603_v37 }
 0x114   : > { %v618_v41 = vadd.bf16 %v611_v5, %v602_v39 }
 0x115   : > { %v627_v42 = vmax.bf16 %v1505_v61, %v619_v40 }
 0x116   : > { %v626_v43 = vmax.bf16 %v1505_v61, %v618_v41 }
 0x118   : > { %1327 = vmatprep.mubr.msk.bf16.mxu1 %vm474_vm0, %v626_v43 }
 0x119   : > { %1328 = vmatmul.mubr.msk.bf16.gmra.mrb[12].mxu1 %vm474_vm0, %v627_v42 }
 0x1d4   : > { %v1317_v46 = vpop.f32.mrb[0].mxu1 }
 0x1d5   : > { %v702_v47 = vpop.f32.mrb[1].mxu1 }
 0x1d6   : > { %v1318_v49 = vpop.f32.mrb[2].mxu1 }
 0x1d7   : > { %v766_v50 = vpack.c.bf16 %v1318_v49, %v1317_v46  ;;  %v705_v51 = vpop.f32.mrb[3].mxu1 }
 0x1d8   : > { %v765_v52 = vpack.c.bf16 %v705_v51, %v702_v47 }
 0x1d9   : > { %v782_v53 = vadd.bf16 %v1698_v48, %v766_v50 }
 0x1da   : > { %v781_v54 = vadd.bf16 %v1698_v48, %v765_v52 }
 0x1db   : > { %v790_v55 = vmax.bf16 %v1505_v61, %v782_v53 }
 0x1dc   : > { %v789_v56 = vmax.bf16 %v1505_v61, %v781_v54  ;;  %v1321_v57 = vpop.f32.mrb[4].mxu1 }
 0x1dd   : > { %v718_v59 = vpop.f32.mrb[5].mxu1  ;;  %v799_v60 = vunpack.c.l.bf16 %v790_v55  ;;  %v800_v0 = vunpack.c.h.bf16 %v790_v55 }
 0x1de   : > { %v1322_v1 = vpop.f32.mrb[6].mxu1  ;;  %v797_v3 = vunpack.c.l.bf16 %v789_v56  ;;  %v798_v4 = vunpack.c.h.bf16 %v789_v56 }
 0x1df   : > { %v768_v5 = vpack.c.bf16 %v1322_v1, %v1321_v57  ;;  %v721_v6 = vpop.f32.mrb[7].mxu1  ;;  %v822_v7 = vmul.f32 %v1707_v58, %v799_v60  ;;  %v823_v12 = vmul.f32 %v1707_v58, %v800_v0 }
 0x1e0   : > { %v767_v8 = vpack.c.bf16 %v721_v6, %v718_v59  ;;  %v820_v9 = vmul.f32 %v1707_v58, %v797_v3  ;;  %v821_v15 = vmul.f32 %v1707_v58, %v798_v4  ;;  %v884_v3 = vld [vmem:[#allocation2] sm:$0x1] }
 0x1e1   : > { %v784_v10 = vadd.bf16 %v1698_v48, %v768_v5  ;;  %v842_v11 = vsel %vm474_vm0, %v822_v7, 0.0  ;;  %v845_v19 = vsel %vm474_vm0, %v823_v12, 0.0 }
 0x1e2   : > { %v783_v13 = vadd.bf16 %v1698_v48, %v767_v8  ;;  %843 = vadd.xlane.f32.xlu1 %v842_v11  ;;  %v836_v14 = vsel %vm474_vm0, %v820_v9, 0.0  ;;  %v839_v22 = vsel %vm474_vm0, %v821_v15, 0.0 }
 0x1e3   : > { %v792_v16 = vmax.bf16 %v1505_v61, %v784_v10  ;;  %837 = vadd.xlane.f32.xlu0 %v836_v14 }
 0x1e4   : > { %v791_v17 = vmax.bf16 %v1505_v61, %v783_v13  ;;  %v1325_v18 = vpop.f32.mrb[8].mxu1 }
 0x1e5   : > { %v734_v20 = vpop.f32.mrb[9].mxu1  ;;  %v803_v21 = vunpack.c.l.bf16 %v792_v16  ;;  %v804_v36 = vunpack.c.h.bf16 %v792_v16 }
 0x1e6   : > { %846 = vadd.xlane.f32.xlu1 %v845_v19  ;;  %v802_v23 = vunpack.c.h.bf16 %v791_v17  ;;  %v1326_v24 = vpop.f32.mrb[10].mxu1  ;;  %v801_v25 = vunpack.c.l.bf16 %v791_v17 }
 0x1e7   : > { %840 = vadd.xlane.f32.xlu0 %v839_v22  ;;  %v826_v26 = vmul.f32 %v1707_v58, %v803_v21  ;;  %v770_v27 = vpack.c.bf16 %v1326_v24, %v1325_v18  ;;  %v737_v28 = vpop.f32.mrb[11].mxu1  ;;  %v827_v43 = vmul.f32 %v1707_v58, %v804_v36 }
 0x1e8   : > { %v825_v29 = vmul.f32 %v1707_v58, %v802_v23  ;;  %v769_v30 = vpack.c.bf16 %v737_v28, %v734_v20  ;;  %v824_v34 = vmul.f32 %v1707_v58, %v801_v25 }
 0x1e9   : > { %v854_v31 = vsel %vm474_vm0, %v826_v26, 0.0  ;;  %v786_v32 = vadd.bf16 %v1698_v48, %v770_v27  ;;  %v857_v52 = vsel %vm474_vm0, %v827_v43, 0.0 }
 0x1ea   : > { %v851_v33 = vsel %vm474_vm0, %v825_v29, 0.0  ;;  %v785_v35 = vadd.bf16 %v1698_v48, %v769_v30  ;;  %v848_v42 = vsel %vm474_vm0, %v824_v34, 0.0 }
 0x1eb   : > { %855 = vadd.xlane.f32.xlu0 %v854_v31  ;;  %852 = vadd.xlane.f32.xlu1 %v851_v33  ;;  %v794_v37 = vmax.bf16 %v1505_v61, %v786_v32 }
 0x1ec   : > { %v793_v38 = vmax.bf16 %v1505_v61, %v785_v35  ;;  %v1329_v39 = vpop.f32.mrb[12].mxu1 }
 0x1ed   : > { %v750_v40 = vpop.f32.mrb[13].mxu1  ;;  %v807_v41 = vunpack.c.l.bf16 %v794_v37  ;;  %v808_v14 = vunpack.c.h.bf16 %v794_v37 }
 0x1ee   : > { %v1330_v44 = vpop.f32.mrb[14].mxu1  ;;  %v805_v49 = vunpack.c.l.bf16 %v793_v38  ;;  %v806_v53 = vunpack.c.h.bf16 %v793_v38 }
 0x1ef   : > { %849 = vadd.xlane.f32.xlu0 %v848_v42  ;;  %v772_v45 = vpack.c.bf16 %v1330_v44, %v1329_v39  ;;  %v753_v46 = vpop.f32.mrb[15].mxu1  ;;  %v830_v47 = vmul.f32 %v1707_v58, %v807_v41  ;;  %v831_v15 = vmul.f32 %v1707_v58, %v808_v14 }
 0x1f0   : > { %v771_v50 = vpack.c.bf16 %v753_v46, %v750_v40  ;;  %v828_v56 = vmul.f32 %v1707_v58, %v805_v49  ;;  %v829_v0 = vmul.f32 %v1707_v58, %v806_v53 }
 0x1f1   : > { %v788_v51 = vadd.bf16 %v1698_v48, %v772_v45  ;;  %v866_v54 = vsel %vm474_vm0, %v830_v47, 0.0  ;;  %v869_v16 = vsel %vm474_vm0, %v831_v15, 0.0 }
 0x1f2   : > { %v787_v57 = vadd.bf16 %v1698_v48, %v771_v50  ;;  %v860_v59 = vsel %vm474_vm0, %v828_v56, 0.0  ;;  %v863_v4 = vsel %vm474_vm0, %v829_v0, 0.0  ;;  %v1768_v0 = vand.u32 127, %v608_v62 }
 0x1f3   : > { %858 = vadd.xlane.f32.xlu0 %v857_v52  ;;  %v796_v55 = vmax.bf16 %v1505_v61, %v788_v51 }
 0x1f4   : > { %v795_v60 = vmax.bf16 %v1505_v61, %v787_v57  ;;  %v1035_v14 = vadd.s32 4294967280, %v1768_v0 }
 0x1f5   : > { %v811_v1 = vunpack.c.l.bf16 %v796_v55  ;;  %v812_v10 = vunpack.c.h.bf16 %v796_v55 }
 0x1f6   : > { %v809_v6 = vunpack.c.l.bf16 %v795_v60  ;;  %v810_v8 = vunpack.c.h.bf16 %v795_v60 }
 0x1f7   : > { %867 = vadd.xlane.f32.xlu0 %v866_v54  ;;  %v834_v5 = vmul.f32 %v1707_v58, %v811_v1  ;;  %v835_v12 = vmul.f32 %v1707_v58, %v812_v10 }
 0x1f8   : > { %v832_v48 = vmul.f32 %v1707_v58, %v809_v6  ;;  %v833_v9 = vmul.f32 %v1707_v58, %v810_v8  ;;  %v1028_v8 = vadd.s32 4294967288, %v1768_v0 }
 0x1f9   : > { %v878_v7 = vsel %vm474_vm0, %v834_v5, 0.0  ;;  %v881_v13 = vsel %vm474_vm0, %v835_v12, 0.0 }
 0x1fa   : > { %v872_v61 = vsel %vm474_vm0, %v832_v48, 0.0  ;;  %v875_v11 = vsel %vm474_vm0, %v833_v9, 0.0 }
 0x1fb   : > { %861 = vadd.xlane.f32.xlu0 %v860_v59 }
 0x1fc   : > { %887 = vperm.xlu1 %1371, %v884_v3  }
 0x1ff   : > { %864 = vadd.xlane.f32.xlu0 %v863_v4 }
 0x203   : > { %879 = vadd.xlane.f32.xlu0 %v878_v7 }
 0x207   : > { %873 = vadd.xlane.f32.xlu0 %v872_v61 }
 0x20b   : > { %876 = vadd.xlane.f32.xlu0 %v875_v11 }
 0x20f   : > { %882 = vadd.xlane.f32.xlu0 %v881_v13 }
 0x220   : > { %870 = vadd.xlane.f32.xlu1 %v869_v16 }
 0x26f   : > { %v844_v17 = vpop.xlane.xlu1 %843 }
 0x270   : > { %v838_v18 = vpop.xlane.xlu0 %837 }
 0x273   : > { %v847_v20 = vpop.xlane.xlu1 %846 }
 0x274   : > { %v841_v19 = vpop.xlane.xlu0 %840 }
 0x278   : > { %v856_v21 = vpop.xlane.xlu0 %855  ;;  %v853_v22 = vpop.xlane.xlu1 %852 }
 0x27c   : > { %v850_v23 = vpop.xlane.xlu0 %849  ;;  %v888_v25 = vpop.permute.xlu1 %887 }
 0x27d   : > { %v1754_v27 = vrot.slane %v888_v25, %v1675_v2 }
 0x27f   : > { %v894_v29 = vadd.f32 %v1754_v27, %v838_v18  ;;  %v895_v58 = vadd.f32 %v1754_v27, %v841_v19  ;;  %v896_v30 = vadd.f32 %v1754_v27, %v844_v17  ;;  %v897_v35 = vadd.f32 %v1754_v27, %v847_v20 }
 0x280   : > { %v859_v24 = vpop.xlane.xlu0 %858  ;;  %v898_v2 = vadd.f32 %v1754_v27, %v850_v23  ;;  %v899_v38 = vadd.f32 %v1754_v27, %v853_v22  ;;  %v900_v39 = vadd.f32 %v1754_v27, %v856_v21  ;;  %v1026_v17 = vsub.s32 %v1768_v0, %v1669_v63 }
 0x281   : > { %v1252_v31 = vmul.f32 -1.442695, %v894_v29  ;;  %v1253_v33 = vmul.f32 -1.442695, %v895_v58  ;;  %v1254_v34 = vmul.f32 -1.442695, %v896_v30  ;;  %v901_v41 = vadd.f32 %v1754_v27, %v859_v24 }
 0x282   : > { %v1255_v37 = vmul.f32 -1.442695, %v897_v35  ;;  %v1256_v40 = vmul.f32 -1.442695, %v898_v2  ;;  %v1257_v44 = vmul.f32 -1.442695, %v899_v38  ;;  %v1031_v18 = vsub.s32 %v1028_v8, %v1669_v63 }
 0x283   : > { %1377 = vpow2.f32 %v1252_v31  ;;  %v1258_v46 = vmul.f32 -1.442695, %v900_v39  ;;  %v1259_v49 = vmul.f32 -1.442695, %v901_v41  ;;  %v1056_v41 = vadd.s32 4294967256, %v1768_v0 }
 0x284   : > { %v868_v26 = vpop.xlane.xlu0 %867  ;;  %1379 = vpow2.f32 %v1253_v33 }
 0x285   : > { %1381 = vpow2.f32 %v1254_v34  ;;  %v904_v57 = vadd.f32 %v1754_v27, %v868_v26  ;;  %v1038_v26 = vsub.s32 %v1035_v14, %v1669_v63 }
 0x286   : > { %1383 = vpow2.f32 %v1255_v37 }
 0x287   : > { %1385 = vpow2.f32 %v1256_v40  ;;  %v1262_v5 = vmul.f32 -1.442695, %v904_v57 }
 0x288   : > { %v862_v28 = vpop.xlane.xlu0 %861  ;;  %1387 = vpow2.f32 %v1257_v44 }
 0x289   : > { %v902_v47 = vadd.f32 %v1754_v27, %v862_v28  ;;  %1389 = vpow2.f32 %v1258_v46  ;;  %v1042_v28 = vadd.s32 4294967272, %v1768_v0 }
 0x28a   : > { %1391 = vpow2.f32 %v1259_v49 }
 0x28b   : > { %v1260_v55 = vmul.f32 -1.442695, %v902_v47  ;;  %v1045_v38 = vsub.s32 %v1042_v28, %v1669_v63  ;;  %v1063_v47 = vadd.s32 4294967248, %v1768_v0 }
 0x28c   : > { %v865_v32 = vpop.xlane.xlu0 %864 }
 0x28d   : > { %v1378_v43 = vpop.eup %1377  ;;  %v903_v52 = vadd.f32 %v1754_v27, %v865_v32 }
 0x28e   : > { %v1380_v45 = vpop.eup %1379  ;;  %v958_v51 = vadd.f32 1.0, %v1378_v43 }
 0x28f   : > { %v1382_v50 = vpop.eup %1381  ;;  %v959_v53 = vadd.f32 1.0, %v1380_v45  ;;  %v1261_v59 = vmul.f32 -1.442695, %v903_v52 }
 0x290   : > { %v880_v36 = vpop.xlane.xlu0 %879  ;;  %v960_v56 = vadd.f32 1.0, %v1382_v50  ;;  %1393 = vrcp.f32 %v958_v51  ;;  %v1384_v60 = vpop.eup %1383 }
 0x291   : > { %1395 = vrcp.f32 %v959_v53  ;;  %v1386_v6 = vpop.eup %1385  ;;  %v961_v7 = vadd.f32 1.0, %v1384_v60  ;;  %v908_v48 = vadd.f32 %v1754_v27, %v880_v36  ;;  %v1077_v60 = vadd.s32 4294967232, %v1768_v0 }
 0x292   : > { %1397 = vpow2.f32 %v1260_v55  ;;  %v1388_v62 = vpop.eup %1387  ;;  %v962_v12 = vadd.f32 1.0, %v1386_v6 }
 0x293   : > { %1399 = vrcp.f32 %v960_v56  ;;  %v1390_v11 = vpop.eup %1389  ;;  %v1266_v15 = vmul.f32 -1.442695, %v908_v48  ;;  %v963_v21 = vadd.f32 1.0, %v1388_v62 }
 0x294   : > { %v874_v42 = vpop.xlane.xlu0 %873  ;;  %1401 = vpow2.f32 %v1261_v59  ;;  %v1392_v13 = vpop.eup %1391  ;;  %v964_v29 = vadd.f32 1.0, %v1390_v11  ;;  %v1070_v59 = vadd.s32 4294967240, %v1768_v0 }
 0x295   : > { %v906_v1 = vadd.f32 %v1754_v27, %v874_v42  ;;  %1403 = vpow2.f32 %v1262_v5  ;;  %v965_v33 = vadd.f32 1.0, %v1392_v13 }
 0x296   : > { %1405 = vrcp.f32 %v961_v7  ;;  %v1073_v62 = vsub.s32 %v1070_v59, %v1669_v63 }
 0x297   : > { %v1264_v61 = vmul.f32 -1.442695, %v906_v1 }
 0x298   : > { %v877_v54 = vpop.xlane.xlu0 %876 }
 0x299   : > { %v907_v3 = vadd.f32 %v1754_v27, %v877_v54  ;;  %1407 = vpow2.f32 %v1264_v61  ;;  %v1059_v54 = vsub.s32 %v1056_v41, %v1669_v63 }
 0x29a   : > { %v1394_v16 = vpop.eup %1393 }
 0x29b   : > { %v1265_v10 = vmul.f32 -1.442695, %v907_v3  ;;  %v1396_v20 = vpop.eup %1395  ;;  %v1027_v30 = vrot.slane %v1394_v16, %v1026_v17  ;;  %v1066_v3 = vsub.s32 %v1063_v47, %v1669_v63  ;;  %v1091_v16 = vadd.s32 4294967216, %v1768_v0 }
 0x29c   : > { %v883_v4 = vpop.xlane.xlu0 %882  ;;  %v1398_v23 = vpop.eup %1397  ;;  %v1032_v31 = vrot.slane %v1396_v20, %v1031_v18  ;;  %v1098_v17 = vadd.s32 4294967208, %v1768_v0  ;;  %v1105_v20 = vadd.s32 4294967200, %v1768_v0 }
 0x29d   : > { %v909_v9 = vadd.f32 %v1754_v27, %v883_v4  ;;  %1409 = vpow2.f32 %v1265_v10  ;;  %v1400_v25 = vpop.eup %1399  ;;  %v966_v34 = vadd.f32 1.0, %v1398_v23  ;;  %v1084_v4 = vadd.s32 4294967224, %v1768_v0 }
 0x29e   : > { %1411 = vrcp.f32 %v962_v12  ;;  %v1402_v58 = vpop.eup %1401  ;;  %v1039_v35 = vrot.slane %v1400_v25, %v1038_v26  ;;  %v1034_v37 = vsel %vm1033_vm1, %v1032_v31, %v1027_v30  ;;  %v1080_v10 = vsub.s32 %v1077_v60, %v1669_v63 }
 0x29f   : > { %v1267_v19 = vmul.f32 -1.442695, %v909_v9  ;;  %1413 = vpow2.f32 %v1266_v15  ;;  %v967_v36 = vadd.f32 1.0, %v1402_v58  ;;  %v1404_v2 = vpop.eup %1403  ;;  %v1087_v13 = vsub.s32 %v1084_v4, %v1669_v63 }
 0x2a0   : > { %v1406_v39 = vpop.eup %1405  ;;  %v1041_v43 = vsel %vm1040_vm2, %v1039_v35, %v1034_v37  ;;  %v968_v49 = vadd.f32 1.0, %v1404_v2  ;;  %v1112_v23 = vadd.s32 4294967192, %v1768_v0  ;;  %v1119_v25 = vadd.s32 4294967184, %v1768_v0 }
 0x2a1   : > { %1415 = vpow2.f32 %v1267_v19  ;;  %v1046_v46 = vrot.slane %v1406_v39, %v1045_v38  ;;  %v1126_v58 = vadd.s32 4294967176, %v1768_v0 }
 0x2a2   : > { %1417 = vrcp.f32 %v963_v21  ;;  %v1115_v35 = vsub.s32 %v1112_v23, %v1669_v63  ;;  %v1122_v2 = vsub.s32 %v1119_v25, %v1669_v63 }
 0x2a3   : > { %v1408_v40 = vpop.eup %1407  ;;  %v1048_v53 = vsel %vm1047_vm3, %v1046_v46, %v1041_v43 }
 0x2a4   : > { %v970_v51 = vadd.f32 1.0, %v1408_v40 }
 0x2a7   : > { %v1410_v42 = vpop.eup %1409 }
 0x2a8   : > { %v1412_v45 = vpop.eup %1411  ;;  %v971_v55 = vadd.f32 1.0, %v1410_v42 }
 0x2a9   : > { %v1414_v50 = vpop.eup %1413 }
 0x2aa   : > { %v972_v5 = vadd.f32 1.0, %v1414_v50 }
 0x2ab   : > { %v1416_v52 = vpop.eup %1415 }
 0x2ac   : > { %v1418_v56 = vpop.eup %1417  ;;  %v973_v7 = vadd.f32 1.0, %v1416_v52 }
 0x2ad   : > { %v871_v22 = vpop.xlane.xlu1 %870  ;;  %v1060_v61 = vrot.slane %v1418_v56, %v1059_v54 }
 0x2ae   : > { %v905_v24 = vadd.f32 %v1754_v27, %v871_v22  ;;  %v1049_v27 = vadd.s32 4294967264, %v1768_v0  ;;  %v1129_v0 = vsub.s32 %v1126_v58, %v1669_v63 }
 0x2b0   : > { %v1263_v32 = vmul.f32 -1.442695, %v905_v24  ;;  %v1052_v44 = vsub.s32 %v1049_v27, %v1669_v63  ;;  %v1094_v24 = vsub.s32 %v1091_v16, %v1669_v63 }
 0x2b2   : > { %1419 = vpow2.f32 %v1263_v32  ;;  %v1053_v57 = vrot.slane %v1412_v45, %v1052_v44  ;;  %v1108_v32 = vsub.s32 %v1105_v20, %v1669_v63 }
 0x2b3   : > { %1421 = vrcp.f32 %v964_v29  ;;  %v1101_v29 = vsub.s32 %v1098_v17, %v1669_v63 }
 0x2b4   : > { %1423 = vrcp.f32 %v965_v33  ;;  %v1055_v6 = vsel %vm1054_vm4, %v1053_v57, %v1048_v53 }
 0x2b5   : > { %1425 = vrcp.f32 %v966_v34  ;;  %v1062_v12 = vsel %vm1061_vm5, %v1060_v61, %v1055_v6 }
 0x2b6   : > { %1427 = vrcp.f32 %v967_v36 }
 0x2b7   : > { %1429 = vrcp.f32 %v968_v49 }
 0x2b8   : > { %1431 = vrcp.f32 %v970_v51 }
 0x2b9   : > { %1433 = vrcp.f32 %v971_v55 }
 0x2bc   : > { %v1420_v1 = vpop.eup %1419 }
 0x2bd   : > { %v969_v48 = vadd.f32 1.0, %v1420_v1  ;;  %v1422_v8 = vpop.eup %1421 }
 0x2be   : > { %v1424_v9 = vpop.eup %1423  ;;  %v1067_v15 = vrot.slane %v1422_v8, %v1066_v3 }
 0x2bf   : > { %1435 = vrcp.f32 %v969_v48  ;;  %v1426_v11 = vpop.eup %1425  ;;  %v1074_v21 = vrot.slane %v1424_v9, %v1073_v62 }
 0x2c0   : > { %1437 = vrcp.f32 %v972_v5  ;;  %v1428_v14 = vpop.eup %1427  ;;  %v1069_v18 = vsel %vm1068_vm6, %v1067_v15, %v1062_v12  ;;  %v1081_v19 = vrot.slane %v1426_v11, %v1080_v10 }
 0x2c1   : > { %1439 = vrcp.f32 %v973_v7  ;;  %v1088_v22 = vrot.slane %v1428_v14, %v1087_v13  ;;  %v1430_v26 = vpop.eup %1429  ;;  %v1076_v28 = vsel %vm1075_vm7, %v1074_v21, %v1069_v18 }
 0x2c2   : > { %v1432_v30 = vpop.eup %1431  ;;  %v1083_v31 = vsel %vm1082_vm8, %v1081_v19, %v1076_v28  ;;  %v1095_v36 = vrot.slane %v1430_v26, %v1094_v24 }
 0x2c3   : > { %v1434_v33 = vpop.eup %1433  ;;  %v1090_v34 = vsel %vm1089_vm9, %v1088_v22, %v1083_v31  ;;  %v1109_v41 = vrot.slane %v1432_v30, %v1108_v32 }
 0x2c4   : > { %v1097_v40 = vsel %vm1096_vm10, %v1095_v36, %v1090_v34  ;;  %v1116_v43 = vrot.slane %v1434_v33, %v1115_v35 }
 0x2c9   : > { %v1436_v27 = vpop.eup %1435 }
 0x2ca   : > { %v1438_v37 = vpop.eup %1437  ;;  %v1102_v38 = vrot.slane %v1436_v27, %v1101_v29 }
 0x2cb   : > { %v1440_v39 = vpop.eup %1439  ;;  %v1123_v45 = vrot.slane %v1438_v37, %v1122_v2 }
 0x2cc   : > { %v1104_v42 = vsel %vm1103_vm11, %v1102_v38, %v1097_v40  ;;  %v1130_v47 = vrot.slane %v1440_v39, %v1129_v0 }
 0x2cd   : > { %v1111_v44 = vsel %vm1110_vm12, %v1109_v41, %v1104_v42 }
 0x2ce   : > { %v1118_v46 = vsel %vm1117_vm13, %v1116_v43, %v1111_v44 }
 0x2cf   : > { %v1125_v49 = vsel %vm1124_vm14, %v1123_v45, %v1118_v46 }
 0x2d0   : > { %v1132_v63 = vsel %vm1131_vm15, %v1130_v47, %v1125_v49 }
 0x2d1   : > { %1134 = vst [vmem:[%s340_s28] sm:$0x1] %v1132_v63 }
 0x2d2   : > { %1454 = shalt.err (!%p1451_p3)
}
 0x2d3   : > { %s1455_s20 = scalar_lea.hbm %s1815_s14, 16  ;;  %s1459_s26 = scalar_lea.hbm %s1867_s8, 64 }
 0x2d4   : > { %p1456_p4 = scmp.ne.s32.totalorder %s1815_s14, %s1455_s20  ;;  %p1460_p9 = scmp.lt.u32.totalorder %s1815_s14, %s1867_s8 }
 0x2d5   : > { %p1461_p10 = scmp.lt.u32.totalorder %s1459_s26, %s1455_s20  ;;  %p1463_p12 = scmp.lt.u32.totalorder %s1455_s20, %s1815_s14 }
 0x2d6   : > { %p1457_p7 = pnand %p1456_p4, %p1590_p5 }
 0x2d7   : > { %p1462_p11 = por %p1461_p10, %p1460_p9 }
 0x2d8   : > { %p1458_p8 = pneg %p1457_p7 }
 0x2d9   : > { %p1464_p13 = por %p1463_p12, %p1462_p11 }
 0x2db   : > { %p1465_p0 = pnand %p1464_p13, %p1458_p8 }
 0x2dd   : > { %1468 = shalt.err (!%p1465_p0)
}
 0x2de   : > { %1331 = dma.vmem_to_hbm [thread:$0]  (%p1590_p5), %s1817_s7, 16, %s1815_s14, %s1136_s18  }
 0x2df PF: > { %p1337_p1 = scmp.ge.s32.totalorder %s1503_s10, 2  ;;  %s1160_s11 = sand.u32 1, %s1491_s29  }
 0x2e0   : > { %s1161_s13 = scalar_lea.sflag [#allocation4], %s1160_s11 }
 0x2e1   : > { %p1334_p2 = pnand %p1337_p1, %p1594_p6 }
 0x2e3   : > { %1486 = dma.done.wait (!%p1334_p2), %s1161_s13, 16  }
 0x2e4   : > { %1488 = vsyncadd (!%p1334_p2), %s1161_s13, 4294967280  ;;  %p20_p3 = scmp.ge.s32.totalorder %s1578_s12, 6   ;;  %s1870_s29 = smov %s1495_s30 }
 0x2e5   : > { %s1871_s30 = smov %s1499_s9  ;;  %s1872_s9 = smov %s1588_s15 }
 0x2e6   : > { %s1873_s10 = smov %s1578_s12  ;;  %22 = sbr.rel (!%p20_p3) target bundleno = 6 (0x6), region = 90 }
 0x2ed   :  { %1165 = vsyncpa [#allocation4], 1 }
 0x2ee   :  { %1167 = vsyncpa [#allocation4 + $0x1], 1 }

</bundles_post_ra>
